<compile_context>
chip_gen: v7x
topology: tpu7x:2x2x1
jax: 0.10.0
libtpu: 0.0.40
codegen_flags: <defaults>
</compile_context>

<pallas_src>
import functools
import math

import jax
import jax.numpy as jnp
from jax.experimental import pallas as pl
from jax.experimental.pallas import tpu as pltpu


def _round_up(x, m):
    return (x + m - 1) // m * m


# ----------------------------------------------------------------------------
# kernel
# ----------------------------------------------------------------------------
def _cvae_kernel(state_ref, action_ref, noise_ref,
                 p1_ref, p2_ref, p3_ref,          # packed params (HP / LP / AP wide)
                 out_ref,
                 *, sp, ap, lp, hp, max_action):
    f32 = jnp.float32

    def mm(x, w):
        # down-cast activations to the weight dtype at the dot input only;
        # accumulate in f32 on the MXU.
        return jnp.dot(x.astype(w.dtype), w, preferred_element_type=f32)

    def bias(ref, off):
        return ref[off:off + 1, :].astype(f32)

    s = state_ref[...]    # (TB, SP) f32
    a = action_ref[...]   # (TB, AP) f32
    n = noise_ref[...]    # (TB, LP) f32

    # static row offsets into packed buffer 1 (width HP)
    o0 = 0                 # w1s  (SP, HP)
    o1 = o0 + sp           # w1a  (AP, HP)
    o2 = o1 + ap           # b1   (8,  HP)  bias in row 0
    o3 = o2 + 8            # w2   (HP, HP)
    o4 = o3 + hp           # b2   (8,  HP)
    o5 = o4 + 8            # wd1s (SP, HP)
    o6 = o5 + sp           # wd1z (LP, HP)
    o7 = o6 + lp           # bd1  (8,  HP)
    o8 = o7 + 8            # wd2  (HP, HP)
    o9 = o8 + hp           # bd2  (8,  HP)

    # ---- encoder: Linear, ReLU, Linear ; forward wraps in F.relu
    h1 = jnp.maximum(
        mm(s, p1_ref[o0:o0 + sp, :]) + mm(a, p1_ref[o1:o1 + ap, :]) + bias(p1_ref, o2),
        0.0)
    z = jnp.maximum(
        mm(h1, p1_ref[o3:o3 + hp, :]) + bias(p1_ref, o4),
        0.0)

    # ---- mean / log_std heads (packed buffer 2, width LP)
    mean = mm(z, p2_ref[0:hp, :]) + bias(p2_ref, hp)
    log_std = mm(z, p2_ref[hp + 8:hp + 8 + hp, :]) + bias(p2_ref, 2 * hp + 8)
    log_std = jnp.clip(log_std, -4.0, 15.0)
    std = jnp.exp(log_std)

    # ---- reparameterization: z = mean + std * N(0,1)
    z_lat = mean + std * n

    # ---- decoder: Linear, ReLU, Linear, ReLU, Linear
    d1 = jnp.maximum(
        mm(s, p1_ref[o5:o5 + sp, :]) + mm(z_lat, p1_ref[o6:o6 + lp, :]) + bias(p1_ref, o7),
        0.0)
    d2 = jnp.maximum(
        mm(d1, p1_ref[o8:o8 + hp, :]) + bias(p1_ref, o9),
        0.0)
    u = max_action * jnp.tanh(mm(d2, p3_ref[0:hp, :]) + bias(p3_ref, hp))

    # ---- fused lane-dense output slab: [ u | mean | std ], 128-aligned columns
    out_ref[:, 0:ap] = u
    out_ref[:, ap:ap + lp] = mean
    out_ref[:, ap + lp:ap + 2 * lp] = std


# ----------------------------------------------------------------------------
# host-side wrapper
# ----------------------------------------------------------------------------
def cvae_forward(state, action, noise, packed, dims, max_action, block_b=128):
    """Runs the fused CVAE forward kernel. Returns (u, mean, std)."""
    S, A, L, H = dims
    SP, AP, LP, HP = (_round_up(d, 128) for d in (S, A, L, H))
    p1, p2, p3 = packed

    B = state.shape[0]
    TB = min(_round_up(B, 8), max(8, _round_up(block_b, 8)))
    Bp = _round_up(B, TB)
    OUTW = AP + 2 * LP

    def pad_in(x, cols):
        out = jnp.zeros((Bp, cols), jnp.float32)
        return out.at[:x.shape[0], :x.shape[1]].set(x.astype(jnp.float32))

    state_p = pad_in(state, SP)
    action_p = pad_in(action, AP)
    noise_p = pad_in(noise, LP)

    kernel = functools.partial(_cvae_kernel, sp=SP, ap=AP, lp=LP, hp=HP,
                               max_action=float(max_action))

    out = pl.pallas_call(
        kernel,
        grid=(Bp // TB,),
        in_specs=[
            pl.BlockSpec((TB, SP), lambda i: (i, 0)),     # state   (batch-tiled)
            pl.BlockSpec((TB, AP), lambda i: (i, 0)),     # action
            pl.BlockSpec((TB, LP), lambda i: (i, 0)),     # noise
            pl.BlockSpec(p1.shape, lambda i: (0, 0)),     # packed params, fetched once
            pl.BlockSpec(p2.shape, lambda i: (0, 0)),
            pl.BlockSpec(p3.shape, lambda i: (0, 0)),
        ],
        out_specs=pl.BlockSpec((TB, OUTW), lambda i: (i, 0)),
        out_shape=jax.ShapeDtypeStruct((Bp, OUTW), jnp.float32),
        compiler_params=pltpu.CompilerParams(
            dimension_semantics=("parallel",)),
    )(state_p, action_p, noise_p, p1, p2, p3)

    u = out[:B, :A]
    mean = out[:B, AP:AP + L]
    std = out[:B, AP + LP:AP + LP + L]
    return u, mean, std


# ----------------------------------------------------------------------------
# parameter init / packing / pure-JAX reference
# ----------------------------------------------------------------------------
def init_params(key, state_dim, action_dim, latent_dim, hidden_dim):
    """PyTorch-Linear-style init; weights stored as (in, out)."""
    def linear(k, fan_in, fan_out):
        kw, kb = jax.random.split(k)
        bound = 1.0 / math.sqrt(fan_in)
        w = jax.random.uniform(kw, (fan_in, fan_out), jnp.float32, -bound, bound)
        b = jax.random.uniform(kb, (fan_out,), jnp.float32, -bound, bound)
        return w, b

    keys = jax.random.split(key, 7)
    w1, b1 = linear(keys[0], state_dim + action_dim, hidden_dim)     # encoder L1
    w2, b2 = linear(keys[1], hidden_dim, hidden_dim)                 # encoder L2
    wm, bm = linear(keys[2], hidden_dim, latent_dim)                 # mean head
    wls, bls = linear(keys[3], hidden_dim, latent_dim)               # log_std head
    wd1, bd1 = linear(keys[4], state_dim + latent_dim, hidden_dim)   # decoder L1
    wd2, bd2 = linear(keys[5], hidden_dim, hidden_dim)               # decoder L2
    wd3, bd3 = linear(keys[6], hidden_dim, action_dim)               # decoder L3
    return dict(w1=w1, b1=b1, w2=w2, b2=b2, wm=wm, bm=bm, wls=wls, bls=bls,
                wd1=wd1, bd1=bd1, wd2=wd2, bd2=bd2, wd3=wd3, bd3=bd3)


def pack_params(raw, state_dim, action_dim, latent_dim, hidden_dim,
                weight_dtype=jnp.float32):
    """Pad all dims to multiples of 128 and pack into 3 lane-dense buffers."""
    S, A, L, H = state_dim, action_dim, latent_dim, hidden_dim
    SP, AP, LP, HP = (_round_up(d, 128) for d in (S, A, L, H))

    def pad(x, rows, cols):
        x = jnp.asarray(x, jnp.float32)
        if x.ndim == 1:
            x = x[None, :]
        out = jnp.zeros((rows, cols), jnp.float32)
        return out.at[:x.shape[0], :x.shape[1]].set(x)

    w1s, w1a = raw["w1"][:S], raw["w1"][S:]
    wd1s, wd1z = raw["wd1"][:S], raw["wd1"][S:]

    p1 = jnp.concatenate([
        pad(w1s, SP, HP), pad(w1a, AP, HP), pad(raw["b1"], 8, HP),
        pad(raw["w2"], HP, HP), pad(raw["b2"], 8, HP),
        pad(wd1s, SP, HP), pad(wd1z, LP, HP), pad(raw["bd1"], 8, HP),
        pad(raw["wd2"], HP, HP), pad(raw["bd2"], 8, HP),
    ], axis=0).astype(weight_dtype)

    p2 = jnp.concatenate([
        pad(raw["wm"], HP, LP), pad(raw["bm"], 8, LP),
        pad(raw["wls"], HP, LP), pad(raw["bls"], 8, LP),
    ], axis=0).astype(weight_dtype)

    p3 = jnp.concatenate([
        pad(raw["wd3"], HP, AP), pad(raw["bd3"], 8, AP),
    ], axis=0).astype(weight_dtype)

    return (p1, p2, p3)


def cvae_reference(state, action, noise, raw, max_action):
    """Pure-JAX reference for correctness checking."""
    h1 = jax.nn.relu(jnp.concatenate([state, action], 1) @ raw["w1"] + raw["b1"])
    z = jax.nn.relu(h1 @ raw["w2"] + raw["b2"])
    mean = z @ raw["wm"] + raw["bm"]
    log_std = jnp.clip(z @ raw["wls"] + raw["bls"], -4.0, 15.0)
    std = jnp.exp(log_std)
    z_lat = mean + std * noise
    d1 = jax.nn.relu(jnp.concatenate([state, z_lat], 1) @ raw["wd1"] + raw["bd1"])
    d2 = jax.nn.relu(d1 @ raw["wd2"] + raw["bd2"])
    u = max_action * jnp.tanh(d2 @ raw["wd3"] + raw["bd3"])
    return u, mean, std


# ----------------------------------------------------------------------------
# test
# ----------------------------------------------------------------------------
if __name__ == "__main__":
    # Small shapes consistent with the module's forward signature; batch chosen
    # so the grid has >1 tile and batch padding is exercised.
    B, state_dim, action_dim, latent_dim, hidden_dim = 48, 17, 6, 12, 64
    max_action = 2.5
    dims = (state_dim, action_dim, latent_dim, hidden_dim)

    root = jax.random.PRNGKey(0)
    k_s, k_a, k_n, k_p = jax.random.split(root, 4)

    state = jax.random.normal(k_s, (B, state_dim), jnp.float32)
    action = jax.random.normal(k_a, (B, action_dim), jnp.float32)
    noise = jax.random.normal(k_n, (B, latent_dim), jnp.float32)

    raw = init_params(k_p, state_dim, action_dim, latent_dim, hidden_dim)
    u_ref, mean_ref, std_ref = cvae_reference(state, action, noise, raw, max_action)

    # --- f32 weights path ---
    packed_f32 = pack_params(raw, *dims, weight_dtype=jnp.float32)
    u, mean, std = cvae_forward(state, action, noise, packed_f32, dims,
                                max_action, block_b=32)
    jax.block_until_ready((u, mean, std))

    assert u.shape == (B, action_dim)
    assert mean.shape == (B, latent_dim) and std.shape == (B, latent_dim)
    assert jnp.allclose(u, u_ref, atol=1e-4, rtol=1e-4)
    assert jnp.allclose(mean, mean_ref, atol=1e-4, rtol=1e-4)
    assert jnp.allclose(std, std_ref, atol=1e-4, rtol=1e-4)

    # --- bf16 weights path (halved param DMA bytes, bf16 MXU); loose tolerance ---
    packed_bf16 = pack_params(raw, *dims, weight_dtype=jnp.bfloat16)
    u2, mean2, std2 = cvae_forward(state, action, noise, packed_bf16, dims,
                                   max_action, block_b=32)
    jax.block_until_ready((u2, mean2, std2))
    assert float(jnp.max(jnp.abs(u2 - u_ref))) < 0.15
    assert float(jnp.max(jnp.abs(mean2 - mean_ref))) < 0.15
    assert float(jnp.max(jnp.abs(std2 - std_ref))) < 0.15

    print("KERNEL_OK")
</pallas_src>

<mosaic_0001>
module attributes {stable_mosaic.version = 11 : i64} {
  func.func @_cvae_kernel(%arg0: i32, %arg1: memref<32x128xf32, #tpu.memory_space<vmem>>, %arg2: memref<32x128xf32, #tpu.memory_space<vmem>>, %arg3: memref<32x128xf32, #tpu.memory_space<vmem>>, %arg4: memref<800x128xf32, #tpu.memory_space<vmem>>, %arg5: memref<272x128xf32, #tpu.memory_space<vmem>>, %arg6: memref<136x128xf32, #tpu.memory_space<vmem>>, %arg7: memref<32x384xf32, #tpu.memory_space<vmem>>) attributes {dimension_semantics = [#tpu.dimension_semantics<parallel>], iteration_bounds = array<i64: 2>, scalar_prefetch = 0 : i64, scratch_operands = 0 : i64, tpu.core_type = #tpu.core_type<tc>, window_params = [{transform_indices = @transform_0, window_bounds = array<i64: 32, 128>}, {transform_indices = @transform_1, window_bounds = array<i64: 32, 128>}, {transform_indices = @transform_2, window_bounds = array<i64: 32, 128>}, {pipeline_mode = #tpu.pipeline_mode<synchronous>, transform_indices = @transform_3, window_bounds = array<i64: 800, 128>}, {pipeline_mode = #tpu.pipeline_mode<synchronous>, transform_indices = @transform_4, window_bounds = array<i64: 272, 128>}, {pipeline_mode = #tpu.pipeline_mode<synchronous>, transform_indices = @transform_5, window_bounds = array<i64: 136, 128>}, {transform_indices = @transform_6, window_bounds = array<i64: 32, 384>}]} {
    %c0 = arith.constant 0 : index
    %c0_0 = arith.constant 0 : index
    %0 = vector.load %arg1[%c0, %c0_0] : memref<32x128xf32, #tpu.memory_space<vmem>>, vector<32x128xf32>
    %c0_1 = arith.constant 0 : index
    %c0_2 = arith.constant 0 : index
    %1 = vector.load %arg2[%c0_1, %c0_2] : memref<32x128xf32, #tpu.memory_space<vmem>>, vector<32x128xf32>
    %c0_3 = arith.constant 0 : index
    %c0_4 = arith.constant 0 : index
    %2 = vector.load %arg3[%c0_3, %c0_4] : memref<32x128xf32, #tpu.memory_space<vmem>>, vector<32x128xf32>
    %c0_5 = arith.constant 0 : index
    %c0_6 = arith.constant 0 : index
    %3 = vector.load %arg4[%c0_5, %c0_6] : memref<800x128xf32, #tpu.memory_space<vmem>>, vector<128x128xf32>
    %cst = arith.constant dense<0.000000e+00> : vector<32x128xf32>
    %4 = tpu.matmul %0, %3, %cst {dimension_numbers = #tpu.dot_dimension_numbers<[1], [0], [0], [1], [0, 0, 1, 1], [], []>} : vector<32x128xf32>, vector<128x128xf32>, vector<32x128xf32> -> vector<32x128xf32>
    %c128 = arith.constant 128 : index
    %c0_7 = arith.constant 0 : index
    %5 = vector.load %arg4[%c128, %c0_7] : memref<800x128xf32, #tpu.memory_space<vmem>>, vector<128x128xf32>
    %cst_8 = arith.constant dense<0.000000e+00> : vector<32x128xf32>
    %6 = tpu.matmul %1, %5, %cst_8 {dimension_numbers = #tpu.dot_dimension_numbers<[1], [0], [0], [1], [0, 0, 1, 1], [], []>} : vector<32x128xf32>, vector<128x128xf32>, vector<32x128xf32> -> vector<32x128xf32>
    %7 = arith.addf %4, %6 : vector<32x128xf32>
    %c256 = arith.constant 256 : index
    %c0_9 = arith.constant 0 : index
    %8 = vector.load %arg4[%c256, %c0_9] : memref<800x128xf32, #tpu.memory_space<vmem>>, vector<1x128xf32>
    %9 = vector.broadcast %8 : vector<1x128xf32> to vector<32x128xf32>
    %10 = arith.addf %7, %9 : vector<32x128xf32>
    %cst_10 = arith.constant 0.000000e+00 : f32
    %11 = vector.broadcast %cst_10 : f32 to vector<32x128xf32>
    %12 = arith.maximumf %10, %11 : vector<32x128xf32>
    %c264 = arith.constant 264 : index
    %c0_11 = arith.constant 0 : index
    %13 = vector.load %arg4[%c264, %c0_11] : memref<800x128xf32, #tpu.memory_space<vmem>>, vector<128x128xf32>
    %cst_12 = arith.constant dense<0.000000e+00> : vector<32x128xf32>
    %14 = tpu.matmul %12, %13, %cst_12 {dimension_numbers = #tpu.dot_dimension_numbers<[1], [0], [0], [1], [0, 0, 1, 1], [], []>} : vector<32x128xf32>, vector<128x128xf32>, vector<32x128xf32> -> vector<32x128xf32>
    %c392 = arith.constant 392 : index
    %c0_13 = arith.constant 0 : index
    %15 = vector.load %arg4[%c392, %c0_13] : memref<800x128xf32, #tpu.memory_space<vmem>>, vector<1x128xf32>
    %16 = vector.broadcast %15 : vector<1x128xf32> to vector<32x128xf32>
    %17 = arith.addf %14, %16 : vector<32x128xf32>
    %cst_14 = arith.constant 0.000000e+00 : f32
    %18 = vector.broadcast %cst_14 : f32 to vector<32x128xf32>
    %19 = arith.maximumf %17, %18 : vector<32x128xf32>
    %c0_15 = arith.constant 0 : index
    %c0_16 = arith.constant 0 : index
    %20 = vector.load %arg5[%c0_15, %c0_16] : memref<272x128xf32, #tpu.memory_space<vmem>>, vector<128x128xf32>
    %cst_17 = arith.constant dense<0.000000e+00> : vector<32x128xf32>
    %21 = tpu.matmul %19, %20, %cst_17 {dimension_numbers = #tpu.dot_dimension_numbers<[1], [0], [0], [1], [0, 0, 1, 1], [], []>} : vector<32x128xf32>, vector<128x128xf32>, vector<32x128xf32> -> vector<32x128xf32>
    %c128_18 = arith.constant 128 : index
    %c0_19 = arith.constant 0 : index
    %22 = vector.load %arg5[%c128_18, %c0_19] : memref<272x128xf32, #tpu.memory_space<vmem>>, vector<1x128xf32>
    %23 = vector.broadcast %22 : vector<1x128xf32> to vector<32x128xf32>
    %24 = arith.addf %21, %23 : vector<32x128xf32>
    %c136 = arith.constant 136 : index
    %c0_20 = arith.constant 0 : index
    %25 = vector.load %arg5[%c136, %c0_20] : memref<272x128xf32, #tpu.memory_space<vmem>>, vector<128x128xf32>
    %cst_21 = arith.constant dense<0.000000e+00> : vector<32x128xf32>
    %26 = tpu.matmul %19, %25, %cst_21 {dimension_numbers = #tpu.dot_dimension_numbers<[1], [0], [0], [1], [0, 0, 1, 1], [], []>} : vector<32x128xf32>, vector<128x128xf32>, vector<32x128xf32> -> vector<32x128xf32>
    %c264_22 = arith.constant 264 : index
    %c0_23 = arith.constant 0 : index
    %27 = vector.load %arg5[%c264_22, %c0_23] : memref<272x128xf32, #tpu.memory_space<vmem>>, vector<1x128xf32>
    %28 = vector.broadcast %27 : vector<1x128xf32> to vector<32x128xf32>
    %29 = arith.addf %26, %28 : vector<32x128xf32>
    %cst_24 = arith.constant -4.000000e+00 : f32
    %cst_25 = arith.constant 1.500000e+01 : f32
    %30 = vector.broadcast %cst_24 : f32 to vector<32x128xf32>
    %31 = arith.maximumf %30, %29 : vector<32x128xf32>
    %32 = vector.broadcast %cst_25 : f32 to vector<32x128xf32>
    %33 = arith.minimumf %32, %31 : vector<32x128xf32>
    %34 = math.exp %33 : vector<32x128xf32>
    %35 = arith.mulf %34, %2 : vector<32x128xf32>
    %36 = arith.addf %24, %35 : vector<32x128xf32>
    %c400 = arith.constant 400 : index
    %c0_26 = arith.constant 0 : index
    %37 = vector.load %arg4[%c400, %c0_26] : memref<800x128xf32, #tpu.memory_space<vmem>>, vector<128x128xf32>
    %cst_27 = arith.constant dense<0.000000e+00> : vector<32x128xf32>
    %38 = tpu.matmul %0, %37, %cst_27 {dimension_numbers = #tpu.dot_dimension_numbers<[1], [0], [0], [1], [0, 0, 1, 1], [], []>} : vector<32x128xf32>, vector<128x128xf32>, vector<32x128xf32> -> vector<32x128xf32>
    %c528 = arith.constant 528 : index
    %c0_28 = arith.constant 0 : index
    %39 = vector.load %arg4[%c528, %c0_28] : memref<800x128xf32, #tpu.memory_space<vmem>>, vector<128x128xf32>
    %cst_29 = arith.constant dense<0.000000e+00> : vector<32x128xf32>
    %40 = tpu.matmul %36, %39, %cst_29 {dimension_numbers = #tpu.dot_dimension_numbers<[1], [0], [0], [1], [0, 0, 1, 1], [], []>} : vector<32x128xf32>, vector<128x128xf32>, vector<32x128xf32> -> vector<32x128xf32>
    %41 = arith.addf %38, %40 : vector<32x128xf32>
    %c656 = arith.constant 656 : index
    %c0_30 = arith.constant 0 : index
    %42 = vector.load %arg4[%c656, %c0_30] : memref<800x128xf32, #tpu.memory_space<vmem>>, vector<1x128xf32>
    %43 = vector.broadcast %42 : vector<1x128xf32> to vector<32x128xf32>
    %44 = arith.addf %41, %43 : vector<32x128xf32>
    %cst_31 = arith.constant 0.000000e+00 : f32
    %45 = vector.broadcast %cst_31 : f32 to vector<32x128xf32>
    %46 = arith.maximumf %44, %45 : vector<32x128xf32>
    %c664 = arith.constant 664 : index
    %c0_32 = arith.constant 0 : index
    %47 = vector.load %arg4[%c664, %c0_32] : memref<800x128xf32, #tpu.memory_space<vmem>>, vector<128x128xf32>
    %cst_33 = arith.constant dense<0.000000e+00> : vector<32x128xf32>
    %48 = tpu.matmul %46, %47, %cst_33 {dimension_numbers = #tpu.dot_dimension_numbers<[1], [0], [0], [1], [0, 0, 1, 1], [], []>} : vector<32x128xf32>, vector<128x128xf32>, vector<32x128xf32> -> vector<32x128xf32>
    %c792 = arith.constant 792 : index
    %c0_34 = arith.constant 0 : index
    %49 = vector.load %arg4[%c792, %c0_34] : memref<800x128xf32, #tpu.memory_space<vmem>>, vector<1x128xf32>
    %50 = vector.broadcast %49 : vector<1x128xf32> to vector<32x128xf32>
    %51 = arith.addf %48, %50 : vector<32x128xf32>
    %cst_35 = arith.constant 0.000000e+00 : f32
    %52 = vector.broadcast %cst_35 : f32 to vector<32x128xf32>
    %53 = arith.maximumf %51, %52 : vector<32x128xf32>
    %c0_36 = arith.constant 0 : index
    %c0_37 = arith.constant 0 : index
    %54 = vector.load %arg6[%c0_36, %c0_37] : memref<136x128xf32, #tpu.memory_space<vmem>>, vector<128x128xf32>
    %cst_38 = arith.constant dense<0.000000e+00> : vector<32x128xf32>
    %55 = tpu.matmul %53, %54, %cst_38 {dimension_numbers = #tpu.dot_dimension_numbers<[1], [0], [0], [1], [0, 0, 1, 1], [], []>} : vector<32x128xf32>, vector<128x128xf32>, vector<32x128xf32> -> vector<32x128xf32>
    %c128_39 = arith.constant 128 : index
    %c0_40 = arith.constant 0 : index
    %56 = vector.load %arg6[%c128_39, %c0_40] : memref<136x128xf32, #tpu.memory_space<vmem>>, vector<1x128xf32>
    %57 = vector.broadcast %56 : vector<1x128xf32> to vector<32x128xf32>
    %58 = arith.addf %55, %57 : vector<32x128xf32>
    %59 = math.tanh %58 : vector<32x128xf32>
    %cst_41 = arith.constant 2.500000e+00 : f32
    %60 = vector.broadcast %cst_41 : f32 to vector<32x128xf32>
    %61 = arith.mulf %60, %59 : vector<32x128xf32>
    %c0_42 = arith.constant 0 : index
    %c0_43 = arith.constant 0 : index
    %62 = vector.load %arg7[%c0_42, %c0_43] : memref<32x384xf32, #tpu.memory_space<vmem>>, vector<32x128xf32>
    tpu.vector_store %arg7[%c0_42, %c0_43], %61 {strides = array<i32>} : memref<32x384xf32, #tpu.memory_space<vmem>>, vector<32x128xf32>,
    %c0_44 = arith.constant 0 : index
    %c128_45 = arith.constant 128 : index
    %63 = vector.load %arg7[%c0_44, %c128_45] : memref<32x384xf32, #tpu.memory_space<vmem>>, vector<32x128xf32>
    tpu.vector_store %arg7[%c0_44, %c128_45], %24 {strides = array<i32>} : memref<32x384xf32, #tpu.memory_space<vmem>>, vector<32x128xf32>,
    %c0_46 = arith.constant 0 : index
    %c256_47 = arith.constant 256 : index
    %64 = vector.load %arg7[%c0_46, %c256_47] : memref<32x384xf32, #tpu.memory_space<vmem>>, vector<32x128xf32>
    tpu.vector_store %arg7[%c0_46, %c256_47], %34 {strides = array<i32>} : memref<32x384xf32, #tpu.memory_space<vmem>>, vector<32x128xf32>,
    return
  }
  func.func @transform_0(%arg0: i32) -> (i32, i32) {
    %c0_i32 = arith.constant 0 : i32
    %c0_i32_0 = arith.constant 0 : i32
    return %arg0, %c0_i32 : i32, i32
  }
  func.func @transform_1(%arg0: i32) -> (i32, i32) {
    %c0_i32 = arith.constant 0 : i32
    %c0_i32_0 = arith.constant 0 : i32
    return %arg0, %c0_i32 : i32, i32
  }
  func.func @transform_2(%arg0: i32) -> (i32, i32) {
    %c0_i32 = arith.constant 0 : i32
    %c0_i32_0 = arith.constant 0 : i32
    return %arg0, %c0_i32 : i32, i32
  }
  func.func @transform_3(%arg0: i32) -> (i32, i32) {
    %c0_i32 = arith.constant 0 : i32
    %c0_i32_0 = arith.constant 0 : i32
    %c0_i32_1 = arith.constant 0 : i32
    return %c0_i32, %c0_i32_0 : i32, i32
  }
  func.func @transform_4(%arg0: i32) -> (i32, i32) {
    %c0_i32 = arith.constant 0 : i32
    %c0_i32_0 = arith.constant 0 : i32
    %c0_i32_1 = arith.constant 0 : i32
    return %c0_i32, %c0_i32_0 : i32, i32
  }
  func.func @transform_5(%arg0: i32) -> (i32, i32) {
    %c0_i32 = arith.constant 0 : i32
    %c0_i32_0 = arith.constant 0 : i32
    %c0_i32_1 = arith.constant 0 : i32
    return %c0_i32, %c0_i32_0 : i32, i32
  }
  func.func @transform_6(%arg0: i32) -> (i32, i32) {
    %c0_i32 = arith.constant 0 : i32
    %c0_i32_0 = arith.constant 0 : i32
    return %arg0, %c0_i32 : i32, i32
  }
}

</mosaic_0001>

<bundles_post_ra>
// kernel: tpu_custom_call.1
= control target key start
LH: loop header
LB: loop body
LE: loop exit
PB: predicated region body
PF: predicated region fallthrough
CT: control target
= control target key end

     0   :  { %s3261_s0 = inlined_call_operand.hbm [shape: f32[64,128], index: 0, kind: input, shape index: {}]   ;;  %s3262_s1 = inlined_call_operand.hbm [shape: f32[64,128], index: 1, kind: input, shape index: {}]   ;;  %s3263_s2 = inlined_call_operand.hbm [shape: f32[64,128], index: 2, kind: input, shape index: {}]   ;;  %s3264_s3 = inlined_call_operand.hbm [shape: f32[800,128], index: 3, kind: input, shape index: {}]   ;;  %s3265_s4 = inlined_call_operand.hbm [shape: f32[272,128], index: 4, kind: input, shape index: {}]   ;;  %s3266_s5 = inlined_call_operand.hbm [shape: f32[136,128], index: 5, kind: input, shape index: {}]   ;;  %s3267_s6 = inlined_call_operand.hbm [shape: f32[64,384], index: 6, kind: output, shape index: {}]  }
   0x1   :  { %3293 = sst [smem:[#allocation25_spill]] %s3262_s1 }
   0x2   :  { %3294 = sst [smem:[#allocation26_spill]] %s3264_s3 }
   0x3   :  { %3295 = sst [smem:[#allocation27_spill]] %s3267_s6 }
   0x4   :  { %11 = vsyncpa [#allocation3], 0 }
   0x5   :  { %13 = vsyncpa [#allocation3 + $0x1], 0 }
   0x6   :  { %14 = vsyncpa [#allocation6], 0 }
   0x7   :  { %16 = vsyncpa [#allocation6 + $0x1], 0 }
   0x8   :  { %17 = vsyncpa [#allocation9], 0 }
   0x9   :  { %18 = vsyncpa [#allocation12], 0 }
   0xa   :  { %19 = vsyncpa [#allocation4], 0 }
   0xb   :  { %21 = vsyncpa [#allocation4 + $0x1], 0  ;;  %s2859_s21 = smov 0   ;;  %s2861_s22 = smov 0  }
   0xc   :  { %s2863_s23 = smov 0   ;;  %s2865_s24 = smov 0  }
   0xd LB: > { %3296 = sst [smem:[#allocation19_spill]] %s2799_s21  ;;  %s2880_s25 = sadd.s32 4294967295, %s2811_s24   ;;  %s2811_s24 = sphi %s2865_s24, %s3336_s24   ;;  %s2807_s23 = sphi %s2863_s23, %s3340_s23   ;;  %s2803_s22 = sphi %s2861_s22, %s3339_s22   ;;  %s2799_s21 = sphi %s2859_s21, %s3338_s21  }
   0xe   : > { %3297 = sst [smem:[#allocation20_spill]] %s2811_s24  ;;  %s1579_s26 = sadd.s32 4294967294, %s2811_s24  }
   0xf   : > { %s2884_s27 = sadd.s32 1, %s2811_s24   ;;  %s34_s28 = sadd.s32 1, %s2807_s23 }
  0x10   : > { %3298 = sst [smem:[#allocation21_spill]] %s2884_s27  ;;  %s31_s29 = ssub.s32 %s2811_s24, %s2884_s27 }
  0x11   : > { %p41_p0 = scmp.ne.s32.totalorder %s2807_s23, %s2803_s22  ;;  %p32_p1 = scmp.eq.s32.totalorder %s31_s29, 0 }
  0x12   : > { %p42_p2 = scmp.eq.s32.totalorder %s2811_s24, 0  ;;  %p47_p3 = scmp.ne.s32.totalorder %s2803_s22, %s2799_s21 }
  0x13   : > { %p3268_p4 = scmp.eq.s32.totalorder %s2880_s25, 0  ;;  %p186_p7 = scmp.eq.s32.totalorder %s2880_s25, 1 }
  0x14   : > { %s2896_s30 = scalar_select %p32_p1, %s2807_s23, %s34_s28  }
  0x15   : > { %p2898_p5 = por %p42_p2, %p41_p0  ;;  %p2904_p6 = por %p3268_p4, %p47_p3 }
  0x16   : > { %3299 = sst [smem:[#allocation22_spill]] %s2896_s30  ;;  %p192_p8 = scmp.eq.s32.totalorder %s1579_s26, 1 }
  0x17   : > { %s3300_s7 = scalar_select %p2898_p5, 1, 0 }
  0x18   : > { %s3301_s8 = scalar_select %p2904_p6, 1, 0 }
  0x19   : > { %p1580_p9 = scmp.ge.s32.totalorder %s2811_s24, 1  ;;  %p199_p10 = scmp.lt.s32.totalorder %s2811_s24, 3 }
  0x1a   : > { %p2911_p11 = por %p186_p7, %p41_p0  ;;  %p2915_p12 = por %p192_p8, %p47_p3 }
  0x1b   : > { %p2919_p13 = pnand %p1580_p9, %p199_p10  ;;  %s2813_s12 = smov [#allocation8]  }
  0x1c   : > { %s3302_s9 = scalar_select %p2911_p11, 1, 0 }
  0x1d   : > { %s3304_s10 = scalar_select %p2915_p12, 1, 0 }
  0x1e   : > { %3303 = sst [smem:[#allocation23_spill]] %s3302_s9  ;;  %p2472_p1 = pneg %p2919_p13 }
  0x1f   : > { %3305 = sst [smem:[#allocation24_spill]] %s3304_s10  ;;  %s211_s13 = sshll.u32 %s2813_s12, 4  ;;  %s212_s13 = int_to_ptr.vmem [resolvable:$true] %s211_s13 }
  0x20   : > { %s3306_s11 = scalar_select %p2919_p13, 1, 0 }
  0x21   : > { %p2927_p2 = pnand %p2472_p1, %p3268_p4  ;;  %s3272_s15 = sand.u32 1, %s2807_s23  }
  0x22   : > { %s2936_s16 = sshll.u32 %s3272_s15, 5  ;;  %s3308_s3 = sld [smem:[#allocation26_spill]] }
  0x23   : > { %s3307_s14 = scalar_select %p2927_p2, 1, 0 }
  0x24   : > { %p2946_p8 = pneg %p2927_p2 }
  0x26   : > { %s3309_s28 = scalar_select %p2946_p8, 1, 0 }
  0x28   : > { %s2559_s19 = scalar_lea.hbm %s3308_s3, 12800 }
  0x29   : > { %p2560_p7 = scmp.ne.s32.totalorder %s3308_s3, %s2559_s19  ;;  %p2566_p1 = scmp.lt.u32.totalorder %s2559_s19, %s3308_s3 }
  0x2b   : > { %p2562_p9 = pnand %p2946_p8, %p2560_p7 }
  0x2d   : > { %p2563_p10 = pneg %p2562_p9 }
  0x2f   : > { %p2568_p0 = pnand %p2566_p1, %p2563_p10 }
  0x31   : > { %2571 = shalt.err (!%p2568_p0)
}
  0x32   : > { %s2572_s17 = scalar_lea.vmem %s212_s13, 12800  ;;  %p2580_p11 = scmp.lt.s32.totalorder %s212_s13, %s212_s13 }
  0x33   : > { %p2573_p4 = scmp.ne.s32.totalorder %s212_s13, %s2572_s17  ;;  %p2581_p6 = scmp.lt.s32.totalorder %s2572_s17, %s2572_s17 }
  0x35   : > { %p2575_p3 = pnand %p2573_p4, %p2946_p8  ;;  %p2582_p13 = por %p2581_p6, %p2580_p11 }
  0x37   : > { %p2576_p12 = pneg %p2575_p3 }
  0x39   : > { %p2583_p5 = pnand %p2582_p13, %p2576_p12 }
  0x3b   : > { %2586 = shalt.err (!%p2583_p5)
}
  0x3c   : > { %s3275_s18 = smov 128   ;;  %s3277_s19 = smov 8  }
  0x3d   : > { %2475 = dma.hbm_to_vmem [thread:$0]  (!%p2927_p2), %s3308_s3, 12800, %s212_s13, [#allocation9], %s3275_s18, %s3275_s18, %s3277_s19  }
  0x3e   : > { %s2966_s29 = sshll.u32 %s2811_s24, 9  ;;  %p3310_p4 = scmp.ne.s32.totalorder %s3300_s7, 0 }
  0x3f   : > { %p3311_p5 = scmp.lt.s32.totalorder %s2811_s24, 2  ;;  %s272_s17 = sand.u32 1, %s2811_s24  }
  0x40   : > { %s3313_s1 = sld [smem:[#allocation25_spill]]  ;;  %s276_s13 = scalar_lea.vmem [#allocation5], %s2936_s16 }
  0x41   : > { %p2972_p6 = pnand %p3311_p5, %p3310_p4  ;;  %s283_s20 = sshll.u32 %s276_s13, 4  ;;  %s2984_s20 = int_to_ptr.vmem [resolvable:$true] %s283_s20 }
  0x42   : > { %s2986_s7 = scalar_lea.sflag [#allocation6], %s272_s17 }
  0x43   : > { %s3312_s12 = scalar_select %p2972_p6, 1, 0 }
  0x44   : > { %p2992_p12 = pneg %p2972_p6 }
  0x46   : > { %s2981_s27 = scalar_lea.hbm %s3313_s1, %s2966_s29  ;;  %s2592_s19 = scalar_lea.hbm %s3313_s1, 1024 }
  0x47   : > { %s2587_s26 = scalar_lea.hbm %s2981_s27, 512  ;;  %p2593_p3 = scmp.lt.u32.totalorder %s2981_s27, %s3313_s1 }
  0x48   : > { %p2588_p11 = scmp.ne.s32.totalorder %s2981_s27, %s2587_s26  ;;  %p2594_p7 = scmp.lt.u32.totalorder %s2592_s19, %s2587_s26 }
  0x49   : > { %s3314_s18 = scalar_select %p2992_p12, 1, 0 }
  0x4a   : > { %p2590_p13 = pnand %p2992_p12, %p2588_p11  ;;  %p2595_p9 = por %p2594_p7, %p2593_p3 }
  0x4b   : > { %p2596_p10 = scmp.lt.u32.totalorder %s2587_s26, %s2981_s27 }
  0x4c   : > { %p2591_p0 = pneg %p2590_p13 }
  0x4d   : > { %p2597_p1 = por %p2596_p10, %p2595_p9 }
  0x4f   : > { %p2598_p4 = pnand %p2597_p1, %p2591_p0 }
  0x51   : > { %2601 = shalt.err (!%p2598_p4)
}
  0x52   : > { %s2602_s17 = scalar_lea.vmem %s2984_s20, 512  ;;  %s2816_s30 = smov [#allocation5]  }
  0x53   : > { %p2603_p5 = scmp.ne.s32.totalorder %s2984_s20, %s2602_s17  ;;  %s2607_s15 = sshll.u32 %s2816_s30, 4  ;;  %s2608_s15 = int_to_ptr.vmem [resolvable:$false] %s2607_s15 }
  0x54   : > { %s2609_s3 = scalar_lea.vmem %s2608_s15, 1024  ;;  %p2610_p2 = scmp.lt.s32.totalorder %s2984_s20, %s2608_s15 }
  0x55   : > { %p2605_p11 = pnand %p2603_p5, %p2992_p12  ;;  %p2611_p8 = scmp.lt.s32.totalorder %s2609_s3, %s2602_s17 }
  0x57   : > { %p2606_p13 = pneg %p2605_p11  ;;  %p2612_p3 = por %p2611_p8, %p2610_p2 }
  0x59   : > { %p2613_p7 = pnand %p2612_p3, %p2606_p13 }
  0x5b   : > { %2616 = shalt.err (!%p2613_p7)
}
  0x5c   : > { %s3315_s19 = smov 8   ;;  %s3316_s26 = smov 128  }
  0x5d   : > { %2488 = dma.hbm_to_vmem [thread:$0]  (!%p2972_p6), %s2981_s27, 512, %s2984_s20, %s2986_s7, %s3316_s26, %s3316_s26, %s3315_s19  }
  0x5e   : > { %s2817_s13 = smov [#allocation10]   ;;  %s2818_s30 = smov [#allocation11]  }
  0x5f   : > { %s224_s1 = sshll.u32 %s2817_s13, 4  ;;  %s237_s24 = sshll.u32 %s2818_s30, 4  ;;  %s225_s1 = int_to_ptr.vmem [resolvable:$true] %s224_s1  ;;  %s238_s24 = int_to_ptr.vmem [resolvable:$true] %s237_s24 }
  0x60   : > { %s2617_s3 = scalar_lea.hbm %s3265_s4, 4352  ;;  %p3317_p8 = scmp.ne.s32.totalorder %s3309_s28, 0 }
  0x61   : > { %p2618_p2 = scmp.ne.s32.totalorder %s3265_s4, %s2617_s3  ;;  %p2624_p10 = scmp.lt.u32.totalorder %s2617_s3, %s3265_s4 }
  0x63   : > { %p2620_p0 = pnand %p2618_p2, %p3317_p8 }
  0x65   : > { %p2621_p9 = pneg %p2620_p0 }
  0x67   : > { %p2626_p1 = pnand %p2624_p10, %p2621_p9 }
  0x69   : > { %2629 = shalt.err (!%p2626_p1)
}
  0x6a   : > { %s2630_s27 = scalar_lea.vmem %s225_s1, 4352  ;;  %p2638_p13 = scmp.lt.s32.totalorder %s225_s1, %s225_s1 }
  0x6b   : > { %p2631_p4 = scmp.ne.s32.totalorder %s225_s1, %s2630_s27  ;;  %p2639_p3 = scmp.lt.s32.totalorder %s2630_s27, %s2630_s27 }
  0x6d   : > { %p2633_p5 = pnand %p2631_p4, %p3317_p8  ;;  %p2640_p7 = por %p2639_p3, %p2638_p13 }
  0x6f   : > { %p2634_p11 = pneg %p2633_p5 }
  0x71   : > { %p2641_p6 = pnand %p2640_p7, %p2634_p11 }
  0x73   : > { %2644 = shalt.err (!%p2641_p6)
}
  0x74   : > { %p3318_p2 = scmp.ne.s32.totalorder %s3307_s14, 0  ;;  %s2645_s20 = scalar_lea.hbm %s3266_s5, 2176 }
  0x75   : > { %p2646_p0 = scmp.ne.s32.totalorder %s3266_s5, %s2645_s20  ;;  %p2652_p10 = scmp.lt.u32.totalorder %s2645_s20, %s3266_s5 }
  0x76   : > { %2478 = dma.hbm_to_vmem [thread:$0]  (!%p3318_p2), %s3265_s4, 4352, %s225_s1, [#allocation9], %s3316_s26, %s3316_s26, %s3315_s19  }
  0x77   : > { %p2648_p6 = pnand %p2646_p0, %p3317_p8 }
  0x79   : > { %p2649_p9 = pneg %p2648_p6 }
  0x7b   : > { %p2654_p1 = pnand %p2652_p10, %p2649_p9 }
  0x7d   : > { %2657 = shalt.err (!%p2654_p1)
}
  0x7e   : > { %s2658_s3 = scalar_lea.vmem %s238_s24, 2176  ;;  %p2666_p13 = scmp.lt.s32.totalorder %s238_s24, %s238_s24 }
  0x7f   : > { %p2659_p4 = scmp.ne.s32.totalorder %s238_s24, %s2658_s3  ;;  %p2667_p3 = scmp.lt.s32.totalorder %s2658_s3, %s2658_s3 }
  0x81   : > { %p2661_p5 = pnand %p2659_p4, %p3317_p8  ;;  %p2668_p7 = por %p2667_p3, %p2666_p13 }
  0x83   : > { %p2662_p11 = pneg %p2661_p5 }
  0x85   : > { %p2669_p12 = pnand %p2668_p7, %p2662_p11 }
  0x87   : > { %2672 = shalt.err (!%p2669_p12)
}
  0x88   : > { %2481 = dma.hbm_to_vmem [thread:$0]  (!%p3318_p2), %s3266_s5, 2176, %s238_s24, [#allocation12], %s3316_s26, %s3316_s26, %s3315_s19  }
  0x89   : > { %s3065_s21 = scalar_lea.hbm %s3261_s0, %s2966_s29  ;;  %s255_s14 = scalar_lea.vmem [#allocation2], %s2936_s16 }
  0x8a   : > { %s262_s9 = sshll.u32 %s255_s14, 4  ;;  %s3074_s13 = scalar_lea.hbm %s3263_s2, %s2966_s29  ;;  %s3068_s9 = int_to_ptr.vmem [resolvable:$true] %s262_s9 }
  0x8b   : > { %s3319_s30 = sand.u32 1, %s2807_s23   ;;  %s2673_s15 = scalar_lea.hbm %s3065_s21, 512 }
  0x8c   : > { %s3078_s24 = scalar_lea.sflag [#allocation3], %s3319_s30  ;;  %p2674_p12 = scmp.ne.s32.totalorder %s3065_s21, %s2673_s15 }
  0x8d   : > { %p3320_p8 = scmp.ne.s32.totalorder %s3314_s18, 0  ;;  %s2678_s1 = scalar_lea.hbm %s3261_s0, 1024 }
  0x8e   : > { %p2679_p6 = scmp.lt.u32.totalorder %s3065_s21, %s3261_s0  ;;  %p2680_p9 = scmp.lt.u32.totalorder %s2678_s1, %s2673_s15 }
  0x8f   : > { %p2676_p2 = pnand %p2674_p12, %p3320_p8  ;;  %p2682_p1 = scmp.lt.u32.totalorder %s2673_s15, %s3065_s21 }
  0x90   : > { %p2681_p10 = por %p2680_p9, %p2679_p6 }
  0x91   : > { %p2677_p0 = pneg %p2676_p2 }
  0x92   : > { %p2683_p4 = por %p2682_p1, %p2681_p10 }
  0x94   : > { %p2684_p5 = pnand %p2683_p4, %p2677_p0 }
  0x96   : > { %2687 = shalt.err (!%p2684_p5)
}
  0x97   : > { %s2688_s29 = scalar_lea.vmem %s3068_s9, 512  ;;  %s2819_s6 = smov [#allocation2]  }
  0x98   : > { %p2689_p11 = scmp.ne.s32.totalorder %s3068_s9, %s2688_s29  ;;  %s2693_s14 = sshll.u32 %s2819_s6, 4  ;;  %s2694_s14 = int_to_ptr.vmem [resolvable:$false] %s2693_s14 }
  0x99   : > { %s2695_s10 = scalar_lea.vmem %s2694_s14, 1024  ;;  %p2696_p7 = scmp.lt.s32.totalorder %s3068_s9, %s2694_s14 }
  0x9a   : > { %p2691_p13 = pnand %p2689_p11, %p3320_p8  ;;  %p2697_p12 = scmp.lt.s32.totalorder %s2695_s10, %s2688_s29 }
  0x9c   : > { %p2692_p3 = pneg %p2691_p13  ;;  %p2698_p2 = por %p2697_p12, %p2696_p7 }
  0x9e   : > { %p2699_p6 = pnand %p2698_p2, %p2692_p3 }
  0xa0   : > { %2702 = shalt.err (!%p2699_p6)
}
  0xa1   : > { %p3321_p0 = scmp.ne.s32.totalorder %s3312_s12, 0  ;;  %s297_s20 = scalar_lea.vmem [#allocation7], %s2936_s16 }
  0xa2   : > { %s304_s30 = sshll.u32 %s297_s20, 4  ;;  %s2703_s15 = scalar_lea.hbm %s3074_s13, 512  ;;  %s3106_s30 = int_to_ptr.vmem [resolvable:$true] %s304_s30 }
  0xa3   : > { %2485 = dma.hbm_to_vmem [thread:$0]  (!%p3321_p0), %s3065_s21, 512, %s3068_s9, %s3078_s24, %s3316_s26, %s3316_s26, %s3315_s19  }
  0xa4   : > { %p2704_p9 = scmp.ne.s32.totalorder %s3074_s13, %s2703_s15  ;;  %s2708_s1 = scalar_lea.hbm %s3263_s2, 1024 }
  0xa5   : > { %p2709_p4 = scmp.lt.u32.totalorder %s3074_s13, %s3263_s2  ;;  %p2710_p5 = scmp.lt.u32.totalorder %s2708_s1, %s2703_s15 }
  0xa6   : > { %p2706_p10 = pnand %p2704_p9, %p3320_p8  ;;  %p2712_p13 = scmp.lt.u32.totalorder %s2703_s15, %s3074_s13 }
  0xa7   : > { %p2711_p11 = por %p2710_p5, %p2709_p4 }
  0xa8   : > { %p2707_p1 = pneg %p2706_p10 }
  0xa9   : > { %p2713_p3 = por %p2712_p13, %p2711_p11 }
  0xab   : > { %p2714_p7 = pnand %p2713_p3, %p2707_p1 }
  0xad   : > { %2717 = shalt.err (!%p2714_p7)
}
  0xae   : > { %s2718_s16 = scalar_lea.vmem %s3106_s30, 512  ;;  %s2820_s21 = smov [#allocation7]  }
  0xaf   : > { %p2719_p12 = scmp.ne.s32.totalorder %s3106_s30, %s2718_s16  ;;  %s2723_s9 = sshll.u32 %s2820_s21, 4  ;;  %s2724_s9 = int_to_ptr.vmem [resolvable:$false] %s2723_s9 }
  0xb0   : > { %s2725_s24 = scalar_lea.vmem %s2724_s9, 1024  ;;  %p2726_p9 = scmp.lt.s32.totalorder %s3106_s30, %s2724_s9 }
  0xb1   : > { %p2721_p2 = pnand %p2719_p12, %p3320_p8  ;;  %p2727_p10 = scmp.lt.s32.totalorder %s2725_s24, %s2718_s16 }
  0xb3   : > { %p2722_p6 = pneg %p2721_p2  ;;  %p2728_p4 = por %p2727_p10, %p2726_p9 }
  0xb5   : > { %p2729_p5 = pnand %p2728_p4, %p2722_p6 }
  0xb7   : > { %2732 = shalt.err (!%p2729_p5)
}
  0xb8   : > { %2491 = dma.hbm_to_vmem [thread:$0]  (!%p3321_p0), %s3074_s13, 512, %s3106_s30, %s2986_s7, %s3316_s26, %s3316_s26, %s3315_s19  }
  0xb9   : > { %p3322_p8 = scmp.ne.s32.totalorder %s3306_s11, 0 }
  0xba   : > { %s3136_s18 = sand.u32 (!%p3322_p8), 1, %s2803_s22   ;;  %p3323_p1 = scmp.ne.s32.totalorder (!%p3322_p8), %s3301_s8, 0 }
  0xbb   : > { %316 = sbr.rel (%p3322_p8) target bundleno = 1659 (0x67b), region = 44  ;;  %s1595_s29 = sshll.u32 (!%p3322_p8), %s3136_s18, 5 }
  0xbc   : > { %s319_s6 = scalar_lea.sflag (!%p3322_p8), [#allocation3], %s3136_s18  ;;  %s3140_s14 = scalar_lea.vmem (!%p3322_p8), [#allocation2], %s1595_s29 }
  0xc2   : > { %2778 = dma.done.wait (%p3323_p1), %s319_s6, 512  }
  0xc3   : > { %2780 = vsyncadd (%p3323_p1), %s319_s6, 4294966784  ;;  %s327_s12 = sand.u32 1, %s2880_s25   ;;  %s3147_s7 = scalar_lea.vmem [#allocation5], %s1595_s29 }
  0xc4   : > { %s328_s11 = scalar_lea.sflag [#allocation6], %s327_s12 }
  0xc5   : > { %2782 = dma.done.wait (%p3323_p1), %s328_s11, 1024  }
  0xc6   : > { %2784 = vsyncadd (%p3323_p1), %s328_s11, 4294966272  ;;  %s3153_s19 = scalar_lea.vmem [#allocation7], %s1595_s29  ;;  %p3324_p0 = scmp.eq.s32.totalorder %s2880_s25, 0 }
  0xc8   : > { %2786 = dma.done.wait (%p3324_p0), [#allocation9], 17152   ;;  %p3325_p11 = pmov %p3324_p0 }
  0xc9   : > { %p3326_p13 = pmov %p3324_p0 }
  0xca   : > { %2788 = vsyncadd (%p3325_p11), [#allocation9], 4294950144 }
  0xcb   : > { %2790 = dma.done.wait (%p3326_p13), [#allocation12], 2176   ;;  %p3327_p3 = pmov %p3324_p0 }
  0xcc   : > { %v423_v0 = vld [vmem:[#allocation8 + $0x80] sm:$0xff]  ;;  %v424_v1 = vld [vmem:[#allocation8 + $0x88] sm:$0xff]  ;;  %v425_v2 = vld [vmem:[#allocation8 + $0x90] sm:$0xff]  ;;  %s2450_s8 = smul.u32 96, %s3136_s18  ;;  %s3328_s10 = sld [smem:[#allocation23_spill]] }
  0xcd   : > { %2792 = vsyncadd (%p3327_p3), [#allocation12], 4294965120  ;;  %v2138_v3 = vpack.c.bf16 %v424_v1, %v423_v0  ;;  %v426_v4 = vld [vmem:[#allocation8 + $0x98] sm:$0xff]  ;;  %v427_v6 = vld [vmem:[#allocation8 + $0xa0] sm:$0xff]  ;;  %s2451_s13 = smul.u32 1536, %s2880_s25  ;;  %s3329_s17 = sld [smem:[#allocation27_spill]] }
  0xce   : > { %v2142_v5 = vpack.c.bf16 %v426_v4, %v425_v2  ;;  %v428_v7 = vld [vmem:[#allocation8 + $0xa8] sm:$0xff]  ;;  %v399_v9 = vld [vmem:[%s3147_s7] sm:$0xff]  ;;  %v429_v10 = vld [vmem:[#allocation8 + $0xb0] sm:$0xff]  ;;  %s3187_s26 = scalar_lea.vmem [#allocation13], %s2450_s8  ;;  %s1420_s25 = scalar_lea.sflag [#allocation4], %s3136_s18 }
  0xcf   : > { %2139 = vmatprep.subr.bf16.mxu0 %v2138_v3  ;;  %v2146_v8 = vpack.c.bf16 %v428_v7, %v427_v6  ;;  %v430_v11 = vld [vmem:[#allocation8 + $0xb8] sm:$0xff]  ;;  %1828 = vmatprep.mubr.f32.mxu0 %v399_v9  ;;  %v431_v13 = vld [vmem:[#allocation8 + $0xc0] sm:$0xff]  ;;  %v432_v14 = vld [vmem:[#allocation8 + $0xc8] sm:$0xff]  ;;  %s1434_s20 = sshll.u32 %s3187_s26, 4  ;;  %s2821_s27 = smov [#allocation13]   ;;  %s3215_s20 = int_to_ptr.vmem [resolvable:$true] %s1434_s20 }
  0xd0   : > { %2141 = vmatpush3.bf16.msra.mxu0 %v2138_v3  ;;  %v2150_v12 = vpack.c.bf16 %v430_v11, %v429_v10  ;;  %v2154_v15 = vpack.c.bf16 %v432_v14, %v431_v13  ;;  %v433_v16 = vld [vmem:[#allocation8 + $0xd0] sm:$0xff]  ;;  %v622_v17 = vld [vmem:[#allocation8 + $0x108] sm:$0xff]  ;;  %v434_v19 = vld [vmem:[#allocation8 + $0xd8] sm:$0xff]  ;;  %s2733_s1 = scalar_lea.vmem %s3215_s20, 1536  ;;  %s2737_s28 = sshll.u32 %s2821_s27, 4  ;;  %s2738_s28 = int_to_ptr.vmem [resolvable:$false] %s2737_s28 }
  0xd1   : > { %2143 = vmatprep.subr.bf16.mxu0 %v2142_v5  ;;  %v623_v18 = vld [vmem:[#allocation8 + $0x110] sm:$0xff]  ;;  %v624_v21 = vld [vmem:[#allocation8 + $0x118] sm:$0xff]  ;;  %v625_v22 = vld [vmem:[#allocation8 + $0x120] sm:$0xff]  ;;  %v2158_v26 = vpack.c.bf16 %v434_v19, %v433_v16  ;;  %p2734_p7 = scmp.ne.s32.totalorder %s3215_s20, %s2733_s1  ;;  %s2739_s16 = scalar_lea.vmem %s2738_s28, 3072 }
  0xd2   : > { %v2202_v20 = vpack.c.bf16 %v623_v18, %v622_v17  ;;  %v2206_v23 = vpack.c.bf16 %v625_v22, %v624_v21  ;;  %v626_v24 = vld [vmem:[#allocation8 + $0x128] sm:$0xff]  ;;  %v627_v25 = vld [vmem:[#allocation8 + $0x130] sm:$0xff]  ;;  %v435_v27 = vld [vmem:[#allocation8 + $0xe0] sm:$0xff]  ;;  %p3330_p12 = scmp.ne.s32.totalorder %s3328_s10, 0  ;;  %p2740_p9 = scmp.lt.s32.totalorder %s3215_s20, %s2738_s28 }
  0xd3   : > { %v436_v28 = vld [vmem:[#allocation8 + $0xe8] sm:$0xff]  ;;  %v2210_v29 = vpack.c.bf16 %v627_v25, %v626_v24  ;;  %v628_v30 = vld [vmem:[#allocation8 + $0x138] sm:$0xff]  ;;  %v629_v31 = vld [vmem:[#allocation8 + $0x140] sm:$0xff]  ;;  %s3213_s3 = scalar_lea.hbm %s3329_s17, %s2451_s13  ;;  %p2741_p10 = scmp.lt.s32.totalorder %s2739_s16, %s2733_s1 }
  0xd4   : > { %2145 = vmatpush3.bf16.msra.mxu0 %v2142_v5  ;;  %2203 = vmatprep.subr.bf16.mxu1 %v2202_v20  ;;  %v2162_v32 = vpack.c.bf16 %v436_v28, %v435_v27  ;;  %v437_v33 = vld [vmem:[#allocation8 + $0xf0] sm:$0xff]  ;;  %v438_v34 = vld [vmem:[#allocation8 + $0xf8] sm:$0xff]  ;;  %v2214_v35 = vpack.c.bf16 %v629_v31, %v628_v30  ;;  %v630_v36 = vld [vmem:[#allocation8 + $0x148] sm:$0xff]  ;;  %p2735_p2 = pnand %p2734_p7, %p3330_p12 }
  0xd5   : > { %2147 = vmatprep.subr.bf16.mxu0 %v2146_v8  ;;  %2205 = vmatpush3.bf16.msra.mxu1 %v2202_v20  ;;  %v631_v37 = vld [vmem:[#allocation8 + $0x150] sm:$0xff]  ;;  %v2166_v38 = vpack.c.bf16 %v438_v34, %v437_v33  ;;  %v407_v39 = vld [vmem:[#allocation8] sm:$0xff]  ;;  %v408_v40 = vld [vmem:[#allocation8 + $0x8] sm:$0xff]  ;;  %p2742_p4 = por %p2741_p10, %p2740_p9 }
  0xd6   : > { %2207 = vmatprep.subr.bf16.mxu1 %v2206_v23  ;;  %v2218_v41 = vpack.c.bf16 %v631_v37, %v630_v36  ;;  %v632_v42 = vld [vmem:[#allocation8 + $0x158] sm:$0xff]  ;;  %v633_v43 = vld [vmem:[#allocation8 + $0x160] sm:$0xff]  ;;  %v2170_v44 = vpack.c.bf16 %v408_v40, %v407_v39  ;;  %v409_v45 = vld [vmem:[#allocation8 + $0x10] sm:$0xff]  ;;  %p2736_p6 = pneg %p2735_p2 }
  0xd7   : > { %v410_v46 = vld [vmem:[#allocation8 + $0x18] sm:$0xff]  ;;  %v2222_v47 = vpack.c.bf16 %v633_v43, %v632_v42  ;;  %v634_v48 = vld [vmem:[#allocation8 + $0x168] sm:$0xff]  ;;  %v635_v49 = vld [vmem:[#allocation8 + $0x170] sm:$0xff] }
  0xd8   : > { %2149 = vmatpush3.bf16.msra.mxu0 %v2146_v8  ;;  %v400_v50 = vld [vmem:[%s3147_s7 + $0x8] sm:$0xff]  ;;  %v2174_v51 = vpack.c.bf16 %v410_v46, %v409_v45  ;;  %v401_v52 = vld [vmem:[%s3147_s7 + $0x10] sm:$0xff]  ;;  %v411_v53 = vld [vmem:[#allocation8 + $0x20] sm:$0xff]  ;;  %v2226_v55 = vpack.c.bf16 %v635_v49, %v634_v48  ;;  %p2743_p5 = pnand %p2742_p4, %p2736_p6 }
  0xd9   : > { %2151 = vmatprep.subr.bf16.mxu0 %v2150_v12  ;;  %2209 = vmatpush3.bf16.msra.mxu1 %v2206_v23  ;;  %v412_v54 = vld [vmem:[#allocation8 + $0x28] sm:$0xff]  ;;  %v402_v56 = vld [vmem:[%s3147_s7 + $0x18] sm:$0xff]  ;;  %v3168_v58 = vld [vmem:[%s3140_s14] sm:$0xff] }
  0xda   : > { %2211 = vmatprep.subr.bf16.mxu1 %v2210_v29  ;;  %v2178_v57 = vpack.c.bf16 %v412_v54, %v411_v53  ;;  %v413_v59 = vld [vmem:[#allocation8 + $0x30] sm:$0xff]  ;;  %v414_v60 = vld [vmem:[#allocation8 + $0x38] sm:$0xff]  ;;  %v415_v62 = vld [vmem:[#allocation8 + $0x40] sm:$0xff] }
  0xdb   : > { %v2182_v61 = vpack.c.bf16 %v414_v60, %v413_v59  ;;  %v416_v63 = vld [vmem:[#allocation8 + $0x48] sm:$0xff]  ;;  %v417_v1 = vld [vmem:[#allocation8 + $0x50] sm:$0xff]  ;;  %v418_v2 = vld [vmem:[#allocation8 + $0x58] sm:$0xff] }
  0xdc   : > { %2153 = vmatpush3.bf16.msra.mxu0 %v2150_v12  ;;  %v2186_v0 = vpack.c.bf16 %v416_v63, %v415_v62  ;;  %v2190_v3 = vpack.c.bf16 %v418_v2, %v417_v1  ;;  %v419_v4 = vld [vmem:[#allocation8 + $0x60] sm:$0xff]  ;;  %v420_v5 = vld [vmem:[#allocation8 + $0x68] sm:$0xff]  ;;  %v421_v7 = vld [vmem:[#allocation8 + $0x70] sm:$0xff] }
  0xdd   : > { %2155 = vmatprep.subr.bf16.mxu0 %v2154_v15  ;;  %2213 = vmatpush3.bf16.msra.mxu1 %v2210_v29  ;;  %v2194_v6 = vpack.c.bf16 %v420_v5, %v419_v4  ;;  %v422_v8 = vld [vmem:[#allocation8 + $0x78] sm:$0xff]  ;;  %v3172_v10 = vld [vmem:[%s3140_s14 + $0x8] sm:$0xff]  ;;  %v3175_v11 = vld [vmem:[%s3140_s14 + $0x10] sm:$0xff] }
  0xde   : > { %2215 = vmatprep.subr.bf16.mxu1 %v2214_v35  ;;  %v2198_v9 = vpack.c.bf16 %v422_v8, %v421_v7  ;;  %v3180_v12 = vld [vmem:[%s3140_s14 + $0x18] sm:$0xff]  ;;  %v637_v14 = vld [vmem:[#allocation8 + $0x180] sm:$0xff]  ;;  %v733_v17 = vld [vmem:[#allocation10 + $0x8] sm:$0xff] }
  0xdf   : > { %v636_v13 = vld [vmem:[#allocation8 + $0x178] sm:$0xff]  ;;  %v732_v16 = vld [vmem:[#allocation10] sm:$0xff]  ;;  %v838_v18 = vld [vmem:[#allocation10 + $0x88] sm:$0xff] }
  0xe0   : > { %2157 = vmatpush3.bf16.msra.mxu0 %v2154_v15  ;;  %v2230_v15 = vpack.c.bf16 %v637_v14, %v636_v13  ;;  %v2234_v19 = vpack.c.bf16 %v733_v17, %v732_v16  ;;  %v839_v20 = vld [vmem:[#allocation10 + $0x90] sm:$0xff]  ;;  %v840_v22 = vld [vmem:[#allocation10 + $0x98] sm:$0xff]  ;;  %v841_v23 = vld [vmem:[#allocation10 + $0xa0] sm:$0xff] }
  0xe1   : > { %2159 = vmatprep.subr.bf16.mxu0 %v2158_v26  ;;  %2217 = vmatpush3.bf16.msra.mxu1 %v2214_v35  ;;  %v2266_v21 = vpack.c.bf16 %v839_v20, %v838_v18  ;;  %v2270_v24 = vpack.c.bf16 %v841_v23, %v840_v22  ;;  %v842_v25 = vld [vmem:[#allocation10 + $0xa8] sm:$0xff]  ;;  %v844_v28 = vld [vmem:[#allocation10 + $0xb8] sm:$0xff]  ;;  %v845_v29 = vld [vmem:[#allocation10 + $0xc0] sm:$0xff] }
  0xe2   : > { %2219 = vmatprep.subr.bf16.mxu1 %v2218_v41  ;;  %v2278_v30 = vpack.c.bf16 %v845_v29, %v844_v28  ;;  %v846_v31 = vld [vmem:[#allocation10 + $0xc8] sm:$0xff]  ;;  %v848_v34 = vld [vmem:[#allocation10 + $0xd8] sm:$0xff]  ;;  %v849_v35 = vld [vmem:[#allocation10 + $0xe0] sm:$0xff] }
  0xe3   : > { %v2286_v36 = vpack.c.bf16 %v849_v35, %v848_v34  ;;  %v850_v37 = vld [vmem:[#allocation10 + $0xe8] sm:$0xff]  ;;  %v1601_v40 = vld [vmem:[#allocation8 + $0x100] ss:$0 sm:$0xff]  ;;  %v734_v45 = vld [vmem:[#allocation10 + $0x10] sm:$0xff] }
  0xe4   : > { %2161 = vmatpush3.bf16.msra.mxu0 %v2158_v26  ;;  %v843_v26 = vld [vmem:[#allocation10 + $0xb0] sm:$0xff]  ;;  %v735_v46 = vld [vmem:[#allocation10 + $0x18] sm:$0xff]  ;;  %v736_v54 = vld [vmem:[#allocation10 + $0x20] sm:$0xff] }
  0xe5   : > { %2163 = vmatprep.subr.bf16.mxu0 %v2162_v32  ;;  %2221 = vmatpush3.bf16.msra.mxu1 %v2218_v41  ;;  %v2274_v27 = vpack.c.bf16 %v843_v26, %v842_v25  ;;  %v738_v60 = vld [vmem:[#allocation10 + $0x30] sm:$0xff]  ;;  %v740_v63 = vld [vmem:[#allocation10 + $0x40] sm:$0xff]  ;;  %v852_v14 = vld [vmem:[#allocation10 + $0xf8] sm:$0xff] }
  0xe6   : > { %2223 = vmatprep.subr.bf16.mxu1 %v2222_v47  ;;  %v742_v2 = vld [vmem:[#allocation10 + $0x50] sm:$0xff]  ;;  %v744_v5 = vld [vmem:[#allocation10 + $0x60] sm:$0xff]  ;;  %v985_v18 = vld [vmem:[#allocation8 + $0x218] sm:$0xff] }
  0xe7   : > { %v746_v8 = vld [vmem:[#allocation10 + $0x70] sm:$0xff]  ;;  %v1602_v20 = vld [vmem:[#allocation8 + $0x188] ss:$0 sm:$0xff]  ;;  %v986_v25 = vld [vmem:[#allocation8 + $0x220] sm:$0xff] }
  0xe8   : > { %2165 = vmatpush3.bf16.msra.mxu0 %v2162_v32  ;;  %v847_v32 = vld [vmem:[#allocation10 + $0xd0] sm:$0xff]  ;;  %v987_v26 = vld [vmem:[#allocation8 + $0x228] sm:$0xff] }
  0xe9   : > { %2167 = vmatprep.subr.bf16.mxu0 %v2166_v38  ;;  %2225 = vmatpush3.bf16.msra.mxu1 %v2222_v47  ;;  %v2282_v33 = vpack.c.bf16 %v847_v32, %v846_v31  ;;  %v984_v17 = vld [vmem:[#allocation8 + $0x210] sm:$0xff]  ;;  %v2302_v32 = vpack.c.bf16 %v987_v26, %v986_v25 }
  0xea   : > { %2227 = vmatprep.subr.bf16.mxu1 %v2226_v55 }
  0xec   : > { %2169 = vmatpush3.bf16.msra.mxu0 %v2166_v38  ;;  %v851_v38 = vld [vmem:[#allocation10 + $0xf0] sm:$0xff] }
  0xed   : > { %2171 = vmatprep.subr.bf16.mxu0 %v2170_v44  ;;  %2229 = vmatpush3.bf16.msra.mxu1 %v2226_v55  ;;  %v2290_v39 = vpack.c.bf16 %v851_v38, %v850_v37  ;;  %v737_v55 = vld [vmem:[#allocation10 + $0x28] sm:$0xff]  ;;  %v989_v37 = vld [vmem:[#allocation8 + $0x238] sm:$0xff] }
  0xee   : > { %2231 = vmatprep.subr.bf16.mxu1 %v2230_v15  ;;  %v2242_v59 = vpack.c.bf16 %v737_v55, %v736_v54  ;;  %v968_v54 = vld [vmem:[#allocation8 + $0x190] sm:$0xff]  ;;  %v969_v55 = vld [vmem:[#allocation8 + $0x198] sm:$0xff] }
  0xef   : > { %1829 = vmatmul.mubr.f32.vlgmr.msra.gmra.mrb[0].mxu0 %v400_v50 }
  0xf0   : > { %2173 = vmatpush3.bf16.msra.mxu0 %v2170_v44  ;;  %1831 = vmatprep.mubr.f32.mxu0 %v401_v52  ;;  %v2238_v52 = vpack.c.bf16 %v735_v46, %v734_v45  ;;  %v994_v45 = vld [vmem:[#allocation8 + $0x260] sm:$0xff]  ;;  %v995_v46 = vld [vmem:[#allocation8 + $0x268] sm:$0xff] }
  0xf1   : > { %2175 = vmatprep.subr.bf16.mxu0 %v2174_v51  ;;  %2233 = vmatpush3.bf16.msra.mxu1 %v2230_v15  ;;  %v853_v15 = vld [vmem:[#allocation10 + $0x100] sm:$0xff] }
  0xf2   : > { %2235 = vmatprep.subr.bf16.mxu1 %v2234_v19  ;;  %v2294_v16 = vpack.c.bf16 %v853_v15, %v852_v14  ;;  %v1195_v15 = vld [vmem:[#allocation8 + $0x2f8] sm:$0xff] }
  0xf3   : > { %1832 = vmatmul.mubr.f32.gmra.mrb[2].mxu0 %v402_v56 }
  0xf4   : > { %2177 = vmatpush3.bf16.msra.mxu0 %v2174_v51  ;;  %1866 = vmatprep.mubr.f32.mxu0 %v3168_v58 }
  0xf5   : > { %2179 = vmatprep.subr.bf16.mxu0 %v2178_v57 }
  0xf8   : > { %2181 = vmatpush3.bf16.msra.mxu0 %v2178_v57 }
  0xf9   : > { %2183 = vmatprep.subr.bf16.mxu0 %v2182_v61 }
  0xfc   : > { %2185 = vmatpush3.bf16.msra.mxu0 %v2182_v61  ;;  %v739_v61 = vld [vmem:[#allocation10 + $0x38] sm:$0xff] }
  0xfd   : > { %2187 = vmatprep.subr.bf16.mxu0 %v2186_v0  ;;  %v2246_v62 = vpack.c.bf16 %v739_v61, %v738_v60  ;;  %v1185_v60 = vld [vmem:[#allocation8 + $0x2a8] sm:$0xff] }
 0x100   : > { %2189 = vmatpush3.bf16.msra.mxu0 %v2186_v0  ;;  %v741_v0 = vld [vmem:[#allocation10 + $0x48] sm:$0xff] }
 0x101   : > { %2191 = vmatprep.subr.bf16.mxu0 %v2190_v3  ;;  %v2250_v1 = vpack.c.bf16 %v741_v0, %v740_v63  ;;  %v1187_v0 = vld [vmem:[#allocation8 + $0x2b8] sm:$0xff] }
 0x104   : > { %2193 = vmatpush3.bf16.msra.mxu0 %v2190_v3  ;;  %v743_v3 = vld [vmem:[#allocation10 + $0x58] sm:$0xff] }
 0x105   : > { %2195 = vmatprep.subr.bf16.mxu0 %v2194_v6  ;;  %v2254_v4 = vpack.c.bf16 %v743_v3, %v742_v2  ;;  %v1189_v3 = vld [vmem:[#allocation8 + $0x2c8] sm:$0xff] }
 0x108   : > { %2197 = vmatpush3.bf16.msra.mxu0 %v2194_v6  ;;  %v745_v6 = vld [vmem:[#allocation10 + $0x68] sm:$0xff] }
 0x109   : > { %2199 = vmatprep.subr.bf16.mxu0 %v2198_v9  ;;  %v2258_v7 = vpack.c.bf16 %v745_v6, %v744_v5  ;;  %v1191_v6 = vld [vmem:[#allocation8 + $0x2d8] sm:$0xff] }
 0x10c   : > { %2201 = vmatpush3.bf16.msra.mxu0 %v2198_v9  ;;  %v747_v9 = vld [vmem:[#allocation10 + $0x78] sm:$0xff] }
 0x10d   : > { %2267 = vmatprep.subr.bf16.mxu0 %v2266_v21  ;;  %v2262_v13 = vpack.c.bf16 %v747_v9, %v746_v8  ;;  %v1193_v9 = vld [vmem:[#allocation8 + $0x2e8] sm:$0xff] }
 0x10f   : > { %1867 = vmatmul.mubr.f32.vlgmr.msra.gmra.mrb[0].mxu0 %v3172_v10 }
 0x110   : > { %1869 = vmatprep.mubr.f32.mxu0 %v3175_v11  ;;  %2269 = vmatpush3.bf16.msra.mxu0 %v2266_v21 }
 0x111   : > { %2271 = vmatprep.subr.bf16.mxu0 %v2270_v24 }
 0x113   : > { %1870 = vmatmul.mubr.f32.gmra.mrb[2].mxu0 %v3180_v12 }
 0x114   : > { %2273 = vmatpush3.bf16.msra.mxu0 %v2270_v24 }
 0x115   : > { %2275 = vmatprep.subr.bf16.mxu0 %v2274_v27 }
 0x118   : > { %2277 = vmatpush3.bf16.msra.mxu0 %v2274_v27 }
 0x119   : > { %2279 = vmatprep.subr.bf16.mxu0 %v2278_v30 }
 0x11c   : > { %2281 = vmatpush3.bf16.msra.mxu0 %v2278_v30 }
 0x11d   : > { %2283 = vmatprep.subr.bf16.mxu0 %v2282_v33 }
 0x120   : > { %2285 = vmatpush3.bf16.msra.mxu0 %v2282_v33 }
 0x121   : > { %2287 = vmatprep.subr.bf16.mxu0 %v2286_v36 }
 0x124   : > { %2289 = vmatpush3.bf16.msra.mxu0 %v2286_v36  ;;  %v988_v36 = vld [vmem:[#allocation8 + $0x230] sm:$0xff] }
 0x125   : > { %2291 = vmatprep.subr.bf16.mxu0 %v2290_v39  ;;  %v2306_v38 = vpack.c.bf16 %v989_v37, %v988_v36 }
 0x128   : > { %2293 = vmatpush3.bf16.msra.mxu0 %v2290_v39  ;;  %v990_v39 = vld [vmem:[#allocation8 + $0x240] sm:$0xff] }
 0x129   : > { %2295 = vmatprep.subr.bf16.mxu0 %v2294_v16 }
 0x12c   : > { %2297 = vmatpush3.bf16.msra.mxu0 %v2294_v16  ;;  %v1196_v16 = vld [vmem:[#allocation8 + $0x300] sm:$0xff] }
 0x1e2   : > { %v1868_v41 = vpop.f32.mrb[0].mxu0 }
 0x1e3   : > { %v615_v42 = vadd.f32 %v1868_v41, %v1601_v40  ;;  %v590_v43 = vpop.f32.mrb[1].mxu0 }
 0x1e4   : > { %v614_v44 = vadd.f32 %v1601_v40, %v590_v43  ;;  %v993_v43 = vld [vmem:[#allocation8 + $0x258] sm:$0xff] }
 0x1e5   : > { %v619_v49 = vmax.f32 %v615_v42, 0.0  ;;  %v992_v42 = vld [vmem:[#allocation8 + $0x250] sm:$0xff] }
 0x1e6   : > { %v1871_v47 = vpop.f32.mrb[2].mxu0  ;;  %v618_v48 = vmax.f32 %v614_v44, 0.0  ;;  %v2314_v44 = vpack.c.bf16 %v993_v43, %v992_v42 }
 0x1e7   : > { %v617_v50 = vadd.f32 %v1871_v47, %v1601_v40  ;;  %v600_v51 = vpop.f32.mrb[3].mxu0  ;;  %v2318_v47 = vpack.c.bf16 %v995_v46, %v994_v45 }
 0x1e8   : > { %v616_v53 = vadd.f32 %v1601_v40, %v600_v51  ;;  %1904 = vmatprep.mubr.f32.mxu1 %v618_v48  ;;  %v991_v40 = vld [vmem:[#allocation8 + $0x248] sm:$0xff]  ;;  %v996_v48 = vld [vmem:[#allocation8 + $0x270] sm:$0xff]  ;;  %v998_v51 = vld [vmem:[#allocation8 + $0x280] sm:$0xff] }
 0x1e9   : > { %1905 = vmatmul.mubr.f32.vlgmr.msra.gmra.mrb[0].mxu1 %v619_v49  ;;  %v621_v57 = vmax.f32 %v617_v50, 0.0  ;;  %v2310_v41 = vpack.c.bf16 %v991_v40, %v990_v39  ;;  %v997_v49 = vld [vmem:[#allocation8 + $0x278] sm:$0xff] }
 0x1ea   : > { %v620_v56 = vmax.f32 %v616_v53, 0.0  ;;  %2237 = vmatpush3.bf16.msra.mxu1 %v2234_v19  ;;  %v2298_v19 = vpack.c.bf16 %v985_v18, %v984_v17  ;;  %v2322_v50 = vpack.c.bf16 %v997_v49, %v996_v48  ;;  %v2386_v17 = vpack.c.bf16 %v1196_v16, %v1195_v15  ;;  %v1603_v18 = vld [vmem:[#allocation10 + $0x80] ss:$0 sm:$0xff]  ;;  %v404_v48 = vld [vmem:[%s3153_s19 + $0x8] sm:$0xff]  ;;  %v977_v15 = vld [vmem:[#allocation8 + $0x1d8] sm:$0xff] }
 0x1eb   : > { %2239 = vmatprep.subr.bf16.mxu1 %v2238_v52  ;;  %v403_v49 = vld [vmem:[%s3153_s19] sm:$0xff] }
 0x1ec   : > { %1907 = vmatprep.mubr.f32.mxu1 %v620_v56  ;;  %v3183_v56 = vpack.c.bf16 %v969_v55, %v968_v54  ;;  %v970_v54 = vld [vmem:[#allocation8 + $0x1a0] sm:$0xff]  ;;  %v971_v55 = vld [vmem:[#allocation8 + $0x1a8] sm:$0xff] }
 0x1ed   : > { %1908 = vmatmul.mubr.f32.gmra.mrb[2].mxu1 %v621_v57  ;;  %v1183_v57 = vld [vmem:[#allocation8 + $0x298] sm:$0xff] }
 0x1ee   : > { %2241 = vmatpush3.bf16.msra.mxu1 %v2238_v52  ;;  %v999_v52 = vld [vmem:[#allocation8 + $0x288] sm:$0xff] }
 0x1ef   : > { %2243 = vmatprep.subr.bf16.mxu1 %v2242_v59  ;;  %v2326_v53 = vpack.c.bf16 %v999_v52, %v998_v51 }
 0x1f2   : > { %2245 = vmatpush3.bf16.msra.mxu1 %v2242_v59  ;;  %v1184_v59 = vld [vmem:[#allocation8 + $0x2a0] sm:$0xff] }
 0x1f3   : > { %2247 = vmatprep.subr.bf16.mxu1 %v2246_v62  ;;  %v2362_v61 = vpack.c.bf16 %v1184_v59, %v1183_v57  ;;  %v406_v57 = vld [vmem:[%s3153_s19 + $0x18] sm:$0xff] }
 0x1f5   : > { %2363 = vmatprep.subr.bf16.mxu0 %v2362_v61 }
 0x1f6   : > { %2249 = vmatpush3.bf16.msra.mxu1 %v2246_v62  ;;  %v1186_v62 = vld [vmem:[#allocation8 + $0x2b0] sm:$0xff] }
 0x1f7   : > { %2251 = vmatprep.subr.bf16.mxu1 %v2250_v1  ;;  %v2366_v63 = vpack.c.bf16 %v1186_v62, %v1185_v60  ;;  %v405_v60 = vld [vmem:[%s3153_s19 + $0x10] sm:$0xff] }
 0x1fa   : > { %2253 = vmatpush3.bf16.msra.mxu1 %v2250_v1  ;;  %v1188_v1 = vld [vmem:[#allocation8 + $0x2c0] sm:$0xff] }
 0x1fb   : > { %2255 = vmatprep.subr.bf16.mxu1 %v2254_v4  ;;  %v2370_v2 = vpack.c.bf16 %v1188_v1, %v1187_v0  ;;  %v2334_v0 = vpack.c.bf16 %v971_v55, %v970_v54 }
 0x1fe   : > { %2257 = vmatpush3.bf16.msra.mxu1 %v2254_v4  ;;  %v1190_v4 = vld [vmem:[#allocation8 + $0x2d0] sm:$0xff] }
 0x1ff   : > { %2259 = vmatprep.subr.bf16.mxu1 %v2258_v7  ;;  %v2374_v5 = vpack.c.bf16 %v1190_v4, %v1189_v3  ;;  %v972_v3 = vld [vmem:[#allocation8 + $0x1b0] sm:$0xff]  ;;  %v973_v4 = vld [vmem:[#allocation8 + $0x1b8] sm:$0xff] }
 0x202   : > { %2261 = vmatpush3.bf16.msra.mxu1 %v2258_v7  ;;  %v1192_v7 = vld [vmem:[#allocation8 + $0x2e0] sm:$0xff] }
 0x203   : > { %2263 = vmatprep.subr.bf16.mxu1 %v2262_v13  ;;  %v2378_v8 = vpack.c.bf16 %v1192_v7, %v1191_v6  ;;  %v2338_v7 = vpack.c.bf16 %v973_v4, %v972_v3 }
 0x206   : > { %2265 = vmatpush3.bf16.msra.mxu1 %v2262_v13  ;;  %v1194_v13 = vld [vmem:[#allocation8 + $0x2f0] sm:$0xff] }
 0x207   : > { %2299 = vmatprep.subr.bf16.mxu1 %v2298_v19  ;;  %v2382_v14 = vpack.c.bf16 %v1194_v13, %v1193_v9  ;;  %v975_v9 = vld [vmem:[#allocation8 + $0x1c8] sm:$0xff] }
 0x2bc   : > { %v1906_v21 = vpop.f32.mrb[0].mxu1 }
 0x2bd   : > { %v715_v22 = vadd.f32 %v1906_v21, %v1602_v20  ;;  %v709_v23 = vpop.f32.mrb[1].mxu1 }
 0x2be   : > { %v710_v24 = vadd.f32 %v1602_v20, %v709_v23 }
 0x2bf   : > { %v729_v29 = vmax.f32 %v715_v22, 0.0 }
 0x2c0   : > { %v728_v27 = vmax.f32 %v710_v24, 0.0  ;;  %v1909_v28 = vpop.f32.mrb[2].mxu1 }
 0x2c1   : > { %v725_v30 = vadd.f32 %v1909_v28, %v1602_v20  ;;  %v719_v31 = vpop.f32.mrb[3].mxu1 }
 0x2c2   : > { %v720_v33 = vadd.f32 %v1602_v20, %v719_v31  ;;  %1942 = vmatprep.mubr.f32.mxu1 %v728_v27  ;;  %1980 = vmatprep.mubr.f32.mxu0 %v728_v27 }
 0x2c3   : > { %1943 = vmatmul.mubr.f32.vlgmr.msra.gmra.mrb[4].mxu1 %v729_v29  ;;  %1981 = vmatmul.mubr.f32.vlgmr.msra.gmra.mrb[4].mxu0 %v729_v29  ;;  %v731_v35 = vmax.f32 %v725_v30, 0.0 }
 0x2c4   : > { %v730_v34 = vmax.f32 %v720_v33, 0.0  ;;  %2301 = vmatpush3.bf16.msra.mxu1 %v2298_v19  ;;  %2365 = vmatpush3.bf16.msra.mxu0 %v2362_v61  ;;  %v1604_v19 = vld [vmem:[#allocation10 + $0x108] ss:$0 sm:$0xff] }
 0x2c5   : > { %2303 = vmatprep.subr.bf16.mxu1 %v2302_v32  ;;  %2367 = vmatprep.subr.bf16.mxu0 %v2366_v63 }
 0x2c6   : > { %1945 = vmatprep.mubr.f32.mxu1 %v730_v34  ;;  %1983 = vmatprep.mubr.f32.mxu0 %v730_v34 }
 0x2c7   : > { %1946 = vmatmul.mubr.f32.gmra.mrb[6].mxu1 %v731_v35  ;;  %1984 = vmatmul.mubr.f32.gmra.mrb[6].mxu0 %v731_v35 }
 0x2c8   : > { %2305 = vmatpush3.bf16.msra.mxu1 %v2302_v32  ;;  %2369 = vmatpush3.bf16.msra.mxu0 %v2366_v63 }
 0x2c9   : > { %2307 = vmatprep.subr.bf16.mxu1 %v2306_v38  ;;  %2371 = vmatprep.subr.bf16.mxu0 %v2370_v2 }
 0x2cc   : > { %2309 = vmatpush3.bf16.msra.mxu1 %v2306_v38  ;;  %2373 = vmatpush3.bf16.msra.mxu0 %v2370_v2 }
 0x2cd   : > { %2311 = vmatprep.subr.bf16.mxu1 %v2310_v41  ;;  %2375 = vmatprep.subr.bf16.mxu0 %v2374_v5 }
 0x2d0   : > { %2313 = vmatpush3.bf16.msra.mxu1 %v2310_v41  ;;  %2377 = vmatpush3.bf16.msra.mxu0 %v2374_v5 }
 0x2d1   : > { %2315 = vmatprep.subr.bf16.mxu1 %v2314_v44  ;;  %2379 = vmatprep.subr.bf16.mxu0 %v2378_v8 }
 0x2d4   : > { %2317 = vmatpush3.bf16.msra.mxu1 %v2314_v44  ;;  %2381 = vmatpush3.bf16.msra.mxu0 %v2378_v8  ;;  %v974_v8 = vld [vmem:[#allocation8 + $0x1c0] sm:$0xff] }
 0x2d5   : > { %2319 = vmatprep.subr.bf16.mxu1 %v2318_v47  ;;  %2383 = vmatprep.subr.bf16.mxu0 %v2382_v14  ;;  %v2342_v13 = vpack.c.bf16 %v975_v9, %v974_v8 }
 0x2d8   : > { %2321 = vmatpush3.bf16.msra.mxu1 %v2318_v47  ;;  %2385 = vmatpush3.bf16.msra.mxu0 %v2382_v14  ;;  %v976_v14 = vld [vmem:[#allocation8 + $0x1d0] sm:$0xff] }
 0x2d9   : > { %2323 = vmatprep.subr.bf16.mxu1 %v2322_v50  ;;  %2387 = vmatprep.subr.bf16.mxu0 %v2386_v17  ;;  %v2346_v16 = vpack.c.bf16 %v977_v15, %v976_v14  ;;  %v1607_v15 = vld [vmem:[#allocation11 + $0x80] ss:$0 sm:$0xff] }
 0x2dc   : > { %2325 = vmatpush3.bf16.msra.mxu1 %v2322_v50  ;;  %2389 = vmatpush3.bf16.msra.mxu0 %v2386_v17  ;;  %v978_v17 = vld [vmem:[#allocation8 + $0x1e0] sm:$0xff] }
 0x2dd   : > { %2327 = vmatprep.subr.bf16.mxu1 %v2326_v53 }
 0x2e0   : > { %2329 = vmatpush3.bf16.msra.mxu1 %v2326_v53 }
 0x2e1   : > { %2331 = vmatprep.subr.bf16.mxu1 %v3183_v56 }
 0x396   : > { %v1944_v20 = vpop.f32.mrb[4].mxu1  ;;  %v1982_v21 = vpop.f32.mrb[4].mxu0 }
 0x397   : > { %v825_v22 = vadd.f32 %v1944_v20, %v1603_v18  ;;  %v931_v23 = vadd.f32 %v1982_v21, %v1604_v19  ;;  %v819_v24 = vpop.f32.mrb[5].mxu1  ;;  %v925_v25 = vpop.f32.mrb[5].mxu0  ;;  %v981_v20 = vld [vmem:[#allocation8 + $0x1f8] sm:$0xff] }
 0x398   : > { %v820_v26 = vadd.f32 %v1603_v18, %v819_v24  ;;  %v926_v27 = vadd.f32 %v1604_v19, %v925_v25  ;;  %v1197_v24 = vld [vmem:[#allocation8 + $0x308] sm:$0xff]  ;;  %v1198_v25 = vld [vmem:[#allocation8 + $0x310] sm:$0xff] }
 0x399   : > { %1412 = vst [vmem:[%s3187_s26 + $0x20] sm:$0xff] %v825_v22  ;;  %v945_v28 = vmax.f32 %v931_v23, -4.0  ;;  %v983_v23 = vld [vmem:[#allocation8 + $0x208] sm:$0xff] }
 0x39a   : > { %1411 = vst [vmem:[%s3187_s26 + $0x8] sm:$0xff] %v820_v26  ;;  %v944_v29 = vmax.f32 %v926_v27, -4.0  ;;  %v1947_v30 = vpop.f32.mrb[6].mxu1  ;;  %v1985_v31 = vpop.f32.mrb[6].mxu0  ;;  %v1293_v27 = vld [vmem:[#allocation11] sm:$0xff] }
 0x39b   : > { %v949_v32 = vmin.f32 %v945_v28, 15.0  ;;  %v835_v33 = vadd.f32 %v1947_v30, %v1603_v18  ;;  %v941_v34 = vadd.f32 %v1985_v31, %v1604_v19  ;;  %v829_v35 = vpop.f32.mrb[7].mxu1  ;;  %v935_v36 = vpop.f32.mrb[7].mxu0  ;;  %v1294_v28 = vld [vmem:[#allocation11 + $0x8] sm:$0xff]  ;;  %v1296_v31 = vld [vmem:[#allocation11 + $0x18] sm:$0xff] }
 0x39c   : > { %v948_v37 = vmin.f32 %v944_v29, 15.0  ;;  %v830_v38 = vadd.f32 %v1603_v18, %v829_v35  ;;  %v936_v39 = vadd.f32 %v1604_v19, %v935_v36  ;;  %v979_v18 = vld [vmem:[#allocation8 + $0x1e8] sm:$0xff]  ;;  %v980_v19 = vld [vmem:[#allocation8 + $0x1f0] sm:$0xff]  ;;  %v1295_v29 = vld [vmem:[#allocation11 + $0x10] sm:$0xff]  ;;  %v2394_v30 = vpack.c.bf16 %v1294_v28, %v1293_v27 }
 0x39d   : > { %v954_v40 = vmul.f32 1.442695, %v949_v32  ;;  %1414 = vst [vmem:[%s3187_s26 + $0x50] sm:$0xff] %v835_v33  ;;  %v947_v41 = vmax.f32 %v941_v34, -4.0  ;;  %v2354_v21 = vpack.c.bf16 %v981_v20, %v980_v19  ;;  %v2398_v32 = vpack.c.bf16 %v1296_v31, %v1295_v29  ;;  %v1300_v34 = vld [vmem:[#allocation11 + $0x38] sm:$0xff]  ;;  %v1301_v36 = vld [vmem:[#allocation11 + $0x40] sm:$0xff] }
 0x39e   : > { %v952_v42 = vmul.f32 1.442695, %v948_v37  ;;  %1413 = vst [vmem:[%s3187_s26 + $0x38] sm:$0xff] %v830_v38  ;;  %v946_v43 = vmax.f32 %v936_v39, -4.0  ;;  %v1302_v37 = vld [vmem:[#allocation11 + $0x48] sm:$0xff]  ;;  %v1303_v39 = vld [vmem:[#allocation11 + $0x50] sm:$0xff] }
 0x39f   : > { %2543 = vpow2.f32 %v954_v40  ;;  %v951_v44 = vmin.f32 %v947_v41, 15.0  ;;  %v1304_v40 = vld [vmem:[#allocation11 + $0x58] sm:$0xff] }
 0x3a0   : > { %2545 = vpow2.f32 %v952_v42  ;;  %v950_v45 = vmin.f32 %v946_v43, 15.0  ;;  %v2414_v41 = vpack.c.bf16 %v1304_v40, %v1303_v39  ;;  %v1305_v42 = vld [vmem:[#allocation11 + $0x60] sm:$0xff]  ;;  %v1306_v43 = vld [vmem:[#allocation11 + $0x68] sm:$0xff] }
 0x3a1   : > { %v958_v46 = vmul.f32 1.442695, %v951_v44  ;;  %v2418_v44 = vpack.c.bf16 %v1306_v43, %v1305_v42 }
 0x3a2   : > { %v956_v47 = vmul.f32 1.442695, %v950_v45  ;;  %v1605_v45 = vld [vmem:[#allocation8 + $0x290] ss:$0 sm:$0xff] }
 0x3a3   : > { %2547 = vpow2.f32 %v958_v46 }
 0x3a4   : > { %2549 = vpow2.f32 %v956_v47 }
 0x3a9   : > { %v2544_v50 = vpop.eup %2543 }
 0x3aa   : > { %v2546_v51 = vpop.eup %2545  ;;  %v961_v52 = vmul.f32 %v2544_v50, %v404_v48  ;;  %1416 = vst [vmem:[%s3187_s26 + $0x28] sm:$0xff] %v2544_v50 }
 0x3ab   : > { %1415 = vst [vmem:[%s3187_s26 + $0x10] sm:$0xff] %v2546_v51  ;;  %v960_v53 = vmul.f32 %v2546_v51, %v403_v49 }
 0x3ac   : > { %v965_v59 = vadd.f32 %v961_v52, %v825_v22  ;;  %v982_v22 = vld [vmem:[#allocation8 + $0x200] sm:$0xff] }
 0x3ad   : > { %v2548_v61 = vpop.eup %2547  ;;  %v964_v62 = vadd.f32 %v960_v53, %v820_v26  ;;  %v2390_v26 = vpack.c.bf16 %v1198_v25, %v1197_v24 }
 0x3ae   : > { %v2550_v63 = vpop.eup %2549  ;;  %1418 = vst [vmem:[%s3187_s26 + $0x58] sm:$0xff] %v2548_v61  ;;  %v963_v1 = vmul.f32 %v2548_v61, %v406_v57  ;;  %v1308_v61 = vld [vmem:[#allocation11 + $0x78] sm:$0xff] }
 0x3af   : > { %1417 = vst [vmem:[%s3187_s26 + $0x40] sm:$0xff] %v2550_v63  ;;  %2018 = vmatprep.mubr.f32.mxu1 %v964_v62  ;;  %v962_v2 = vmul.f32 %v2550_v63, %v405_v60  ;;  %2391 = vmatprep.subr.bf16.mxu0 %v2390_v26  ;;  %v1307_v60 = vld [vmem:[#allocation11 + $0x70] sm:$0xff]  ;;  %v1606_v63 = vld [vmem:[#allocation8 + $0x318] ss:$0 sm:$0xff] }
 0x3b0   : > { %2019 = vmatmul.mubr.f32.vlgmr.msra.gmra.mrb[8].mxu1 %v965_v59  ;;  %v967_v5 = vadd.f32 %v963_v1, %v835_v33  ;;  %2393 = vmatpush3.bf16.msra.mxu0 %v2390_v26  ;;  %v1297_v33 = vld [vmem:[#allocation11 + $0x20] sm:$0xff]  ;;  %v2422_v62 = vpack.c.bf16 %v1308_v61, %v1307_v60 }
 0x3b1   : > { %2333 = vmatpush3.bf16.msra.mxu1 %v3183_v56  ;;  %v966_v6 = vadd.f32 %v962_v2, %v830_v38  ;;  %v2350_v56 = vpack.c.bf16 %v979_v18, %v978_v17  ;;  %2395 = vmatprep.subr.bf16.mxu0 %v2394_v30  ;;  %v2410_v38 = vpack.c.bf16 %v1302_v37, %v1301_v36 }
 0x3b2   : > { %2335 = vmatprep.subr.bf16.mxu1 %v2334_v0 }
 0x3b3   : > { %2021 = vmatprep.mubr.f32.mxu1 %v966_v6 }
 0x3b4   : > { %2022 = vmatmul.mubr.f32.gmra.mrb[10].mxu1 %v967_v5 }
 0x3b5   : > { %2337 = vmatpush3.bf16.msra.mxu1 %v2334_v0  ;;  %2056 = vmatprep.mubr.f32.mxu1 %v3168_v58  ;;  %v2358_v58 = vpack.c.bf16 %v983_v23, %v982_v22 }
 0x3b6   : > { %2339 = vmatprep.subr.bf16.mxu1 %v2338_v7 }
 0x3b9   : > { %2341 = vmatpush3.bf16.msra.mxu1 %v2338_v7 }
 0x3ba   : > { %2343 = vmatprep.subr.bf16.mxu1 %v2342_v13 }
 0x3bd   : > { %2345 = vmatpush3.bf16.msra.mxu1 %v2342_v13 }
 0x3be   : > { %2347 = vmatprep.subr.bf16.mxu1 %v2346_v16 }
 0x3c1   : > { %2349 = vmatpush3.bf16.msra.mxu1 %v2346_v16 }
 0x3c2   : > { %2351 = vmatprep.subr.bf16.mxu1 %v2350_v56 }
 0x3c5   : > { %2353 = vmatpush3.bf16.msra.mxu1 %v2350_v56 }
 0x3c6   : > { %2355 = vmatprep.subr.bf16.mxu1 %v2354_v21 }
 0x3c9   : > { %2357 = vmatpush3.bf16.msra.mxu1 %v2354_v21 }
 0x3ca   : > { %2359 = vmatprep.subr.bf16.mxu1 %v2358_v58 }
 0x3cd   : > { %2361 = vmatpush3.bf16.msra.mxu1 %v2358_v58 }
 0x3ce   : > { %2426 = vmatprep.subr.bf16.mxu1 %v2394_v30 }
 0x3d0   : > { %2057 = vmatmul.mubr.f32.vlgmr.msra.gmra.mrb[8].mxu1 %v3172_v10  ;;  %v1298_v10 = vld [vmem:[#allocation11 + $0x28] sm:$0xff] }
 0x3d1   : > { %2059 = vmatprep.mubr.f32.mxu1 %v3175_v11  ;;  %2434 = vmatpush3.bf16.msra.mxu1 %v2394_v30  ;;  %v2402_v11 = vpack.c.bf16 %v1298_v10, %v1297_v33 }
 0x3d2   : > { %2427 = vmatprep.subr.bf16.mxu1 %v2398_v32 }
 0x3d4   : > { %2060 = vmatmul.mubr.f32.gmra.mrb[10].mxu1 %v3180_v12  ;;  %v1299_v12 = vld [vmem:[#allocation11 + $0x30] sm:$0xff] }
 0x3d5   : > { %2435 = vmatpush3.bf16.msra.mxu1 %v2398_v32  ;;  %v2406_v35 = vpack.c.bf16 %v1300_v34, %v1299_v12 }
 0x3d6   : > { %2428 = vmatprep.subr.bf16.mxu1 %v2402_v11 }
 0x3d9   : > { %2436 = vmatpush3.bf16.msra.mxu1 %v2402_v11 }
 0x3da   : > { %2429 = vmatprep.subr.bf16.mxu1 %v2406_v35 }
 0x3dd   : > { %2437 = vmatpush3.bf16.msra.mxu1 %v2406_v35 }
 0x3de   : > { %2430 = vmatprep.subr.bf16.mxu1 %v2410_v38 }
 0x3e1   : > { %2438 = vmatpush3.bf16.msra.mxu1 %v2410_v38 }
 0x3e2   : > { %2431 = vmatprep.subr.bf16.mxu1 %v2414_v41 }
 0x3e5   : > { %2439 = vmatpush3.bf16.msra.mxu1 %v2414_v41 }
 0x3e6   : > { %2432 = vmatprep.subr.bf16.mxu1 %v2418_v44 }
 0x3e9   : > { %2440 = vmatpush3.bf16.msra.mxu1 %v2418_v44 }
 0x3ea   : > { %2433 = vmatprep.subr.bf16.mxu1 %v2422_v62 }
 0x3ed   : > { %2441 = vmatpush3.bf16.msra.mxu1 %v2422_v62 }
 0x4a3   : > { %v2058_v46 = vpop.f32.mrb[8].mxu1 }
 0x4a4   : > { %v1176_v47 = vadd.f32 %v2058_v46, %v1605_v45  ;;  %v1151_v48 = vpop.f32.mrb[9].mxu1 }
 0x4a5   : > { %v1175_v49 = vadd.f32 %v1605_v45, %v1151_v48 }
 0x4a6   : > { %v1180_v52 = vmax.f32 %v1176_v47, 0.0 }
 0x4a7   : > { %v1179_v50 = vmax.f32 %v1175_v49, 0.0  ;;  %v2061_v51 = vpop.f32.mrb[10].mxu1 }
 0x4a8   : > { %v1178_v53 = vadd.f32 %v2061_v51, %v1605_v45  ;;  %v1161_v54 = vpop.f32.mrb[11].mxu1 }
 0x4a9   : > { %v1177_v55 = vadd.f32 %v1605_v45, %v1161_v54  ;;  %2094 = vmatprep.mubr.f32.mxu0 %v1179_v50 }
 0x4aa   : > { %2095 = vmatmul.mubr.f32.vlgmr.msra.gmra.mrb[8].mxu0 %v1180_v52  ;;  %v1182_v59 = vmax.f32 %v1178_v53, 0.0 }
 0x4ab   : > { %v1181_v57 = vmax.f32 %v1177_v55, 0.0  ;;  %2397 = vmatpush3.bf16.msra.mxu0 %v2394_v30 }
 0x4ac   : > { %2399 = vmatprep.subr.bf16.mxu0 %v2398_v32 }
 0x4ad   : > { %2097 = vmatprep.mubr.f32.mxu0 %v1181_v57 }
 0x4ae   : > { %2098 = vmatmul.mubr.f32.gmra.mrb[10].mxu0 %v1182_v59 }
 0x4af   : > { %2401 = vmatpush3.bf16.msra.mxu0 %v2398_v32 }
 0x4b0   : > { %2403 = vmatprep.subr.bf16.mxu0 %v2402_v11 }
 0x4b3   : > { %2405 = vmatpush3.bf16.msra.mxu0 %v2402_v11 }
 0x4b4   : > { %2407 = vmatprep.subr.bf16.mxu0 %v2406_v35 }
 0x4b7   : > { %2409 = vmatpush3.bf16.msra.mxu0 %v2406_v35 }
 0x4b8   : > { %2411 = vmatprep.subr.bf16.mxu0 %v2410_v38 }
 0x4bb   : > { %2413 = vmatpush3.bf16.msra.mxu0 %v2410_v38 }
 0x4bc   : > { %2415 = vmatprep.subr.bf16.mxu0 %v2414_v41 }
 0x4bf   : > { %2417 = vmatpush3.bf16.msra.mxu0 %v2414_v41 }
 0x4c0   : > { %2419 = vmatprep.subr.bf16.mxu0 %v2418_v44 }
 0x4c3   : > { %2421 = vmatpush3.bf16.msra.mxu0 %v2418_v44 }
 0x4c4   : > { %2423 = vmatprep.subr.bf16.mxu0 %v2422_v62 }
 0x4c7   : > { %2425 = vmatpush3.bf16.msra.mxu0 %v2422_v62 }
 0x57d   : > { %v2096_v0 = vpop.f32.mrb[8].mxu0 }
 0x57e   : > { %v1276_v1 = vadd.f32 %v2096_v0, %v1606_v63  ;;  %v1270_v2 = vpop.f32.mrb[9].mxu0 }
 0x57f   : > { %v1271_v3 = vadd.f32 %v1606_v63, %v1270_v2 }
 0x580   : > { %v1290_v6 = vmax.f32 %v1276_v1, 0.0 }
 0x581   : > { %v1289_v4 = vmax.f32 %v1271_v3, 0.0  ;;  %v2099_v5 = vpop.f32.mrb[10].mxu0 }
 0x582   : > { %v1286_v7 = vadd.f32 %v2099_v5, %v1606_v63  ;;  %v1280_v8 = vpop.f32.mrb[11].mxu0 }
 0x583   : > { %v1281_v9 = vadd.f32 %v1606_v63, %v1280_v8  ;;  %2132 = vmatprep.mubr.f32.mxu0 %v1289_v4 }
 0x584   : > { %2133 = vmatmul.mubr.f32.vlgmr.msra.gmra.mrb[12].mxu0 %v1290_v6  ;;  %v1292_v14 = vmax.f32 %v1286_v7, 0.0 }
 0x585   : > { %v1291_v13 = vmax.f32 %v1281_v9, 0.0 }
 0x587   : > { %2135 = vmatprep.mubr.f32.mxu1 %v1291_v13 }
 0x588   : > { %2136 = vmatmul.mubr.f32.vlgmr.msra.gmra.mrb[12].mxu1 %v1292_v14 }
 0x657   : > { %v2134_v16 = vpop.f32.mrb[12].mxu0 }
 0x658   : > { %v1386_v17 = vadd.f32 %v2134_v16, %v1607_v15  ;;  %v1380_v18 = vpop.f32.mrb[13].mxu0 }
 0x659   : > { %v1381_v56 = vadd.f32 %v1607_v15, %v1380_v18 }
 0x65a   : > { %2551 = vtanh.f32 %v1386_v17 }
 0x65b   : > { %2553 = vtanh.f32 %v1381_v56  ;;  %v2137_v19 = vpop.f32.mrb[12].mxu1 }
 0x65c   : > { %v1396_v20 = vadd.f32 %v2137_v19, %v1607_v15  ;;  %v1390_v21 = vpop.f32.mrb[13].mxu1 }
 0x65d   : > { %v1391_v22 = vadd.f32 %v1607_v15, %v1390_v21 }
 0x65e   : > { %2555 = vtanh.f32 %v1396_v20 }
 0x65f   : > { %2557 = vtanh.f32 %v1391_v22 }
 0x664   : > { %v2552_v23 = vpop.eup %2551 }
 0x665   : > { %v2554_v58 = vpop.eup %2553  ;;  %v1404_v24 = vmul.f32 2.5, %v2552_v23 }
 0x666   : > { %v1403_v25 = vmul.f32 2.5, %v2554_v58 }
 0x667   : > { %1408 = vst [vmem:[%s3187_s26 + $0x18] sm:$0xff] %v1404_v24 }
 0x668   : > { %v2556_v26 = vpop.eup %2555  ;;  %1407 = vst [vmem:[%s3187_s26] sm:$0xff] %v1403_v25 }
 0x669   : > { %v2558_v27 = vpop.eup %2557  ;;  %v1406_v28 = vmul.f32 2.5, %v2556_v26 }
 0x66a   : > { %v1405_v29 = vmul.f32 2.5, %v2558_v27 }
 0x66b   : > { %1410 = vst [vmem:[%s3187_s26 + $0x48] sm:$0xff] %v1406_v28 }
 0x66c   : > { %1409 = vst [vmem:[%s3187_s26 + $0x30] sm:$0xff] %v1405_v29 }
 0x66d   : > { %2746 = shalt.err (!%p2743_p5)
}
 0x66e   : > { %s2747_s21 = scalar_lea.hbm %s3213_s3, 1536  ;;  %s2751_s29 = scalar_lea.hbm %s3329_s17, 3072 }
 0x66f   : > { %p2748_p8 = scmp.ne.s32.totalorder %s3213_s3, %s2747_s21  ;;  %p2752_p11 = scmp.lt.u32.totalorder %s3213_s3, %s3329_s17 }
 0x670   : > { %p2753_p13 = scmp.lt.u32.totalorder %s2751_s29, %s2747_s21  ;;  %p2755_p7 = scmp.lt.u32.totalorder %s2747_s21, %s3213_s3 }
 0x671   : > { %p2749_p1 = pnand %p2748_p8, %p3330_p12 }
 0x672   : > { %p2754_p3 = por %p2753_p13, %p2752_p11 }
 0x673   : > { %p2750_p0 = pneg %p2749_p1 }
 0x674   : > { %p2756_p2 = por %p2755_p7, %p2754_p3 }
 0x676   : > { %p2757_p6 = pnand %p2756_p2, %p2750_p0 }
 0x678   : > { %2760 = shalt.err (!%p2757_p6)
}
 0x679   : > { %s2822_s12 = smov 384   ;;  %s2823_s11 = smov 24  }
 0x67a   : > { %2470 = dma.vmem_to_hbm [thread:$0]  (%p3330_p12), %s3215_s20, 1536, %s3213_s3, %s1420_s25, %s2822_s12, %s2822_s12, %s2823_s11  }
 0x67b PF: > { %s3331_s7 = sld [smem:[#allocation19_spill]]  ;;  %s3332_s19 = sld [smem:[#allocation24_spill]] }
 0x67c   : > { %s3333_s8 = sld [smem:[#allocation20_spill]] }
 0x681   : > { %s1449_s26 = sand.u32 1, %s3331_s7   ;;  %p3334_p9 = scmp.ne.s32.totalorder %s3332_s19, 0 }
 0x682   : > { %p3335_p10 = scmp.ge.s32.totalorder %s3333_s8, 2  ;;  %s1450_s13 = scalar_lea.sflag [#allocation4], %s1449_s26 }
 0x684   : > { %p2493_p4 = pnand %p3335_p10, %p3334_p9 }
 0x686   : > { %2794 = dma.done.wait (!%p2493_p4), %s1450_s13, 1536  }
 0x687   : > { %2796 = vsyncadd (!%p2493_p4), %s1450_s13, 4294965760  ;;  %s3336_s24 = sld [smem:[#allocation21_spill]]  ;;  %s3337_s30 = sld [smem:[#allocation22_spill]] }
 0x688   : > { %s3338_s21 = smov %s2803_s22  ;;  %s3339_s22 = smov %s2807_s23 }
 0x68d   : > { %p24_p5 = scmp.ge.s32.totalorder %s3336_s24, 4   ;;  %s3340_s23 = smov %s3337_s30 }
 0x68f   :  { %26 = sbr.rel (!%p24_p5) target bundleno = 13 (0xd), region = 125 }
 0x696   :  { %1455 = vsyncpa [#allocation3], 1 }
 0x697   :  { %1457 = vsyncpa [#allocation3 + $0x1], 1 }
 0x698   :  { %1458 = vsyncpa [#allocation6], 1 }
 0x699   :  { %1460 = vsyncpa [#allocation6 + $0x1], 1 }
 0x69a   :  { %1461 = vsyncpa [#allocation9], 1 }
 0x69b   :  { %1462 = vsyncpa [#allocation12], 1 }
 0x69c   :  { %1463 = vsyncpa [#allocation4], 1 }
 0x69d   :  { %1465 = vsyncpa [#allocation4 + $0x1], 1 }

</bundles_post_ra>
